<compile_context>
chip_gen: v7x
topology: tpu7x:2x2x1
jax: 0.10.0
libtpu: 0.0.40
codegen_flags: <defaults>
</compile_context>

<pallas_src>
import functools

import jax
import jax.numpy as jnp
from jax.experimental import pallas as pl
from jax.experimental.pallas import tpu as pltpu

HIDDEN = 512   # fixed by the module definition
LANE = 128     # TPU lane width


def _round_up(x, m):
    return ((x + m - 1) // m) * m


def _pick_batch_tile(B):
    if B <= 256:
        # Small/medium batch: single grid step, 128-row granularity keeps padded
        # MXU/VPU work minimal on v5e while staying sublane/MXU aligned.
        return max(_round_up(B, 128), 128)
    # B > 256: guarantee >= 2 grid steps so the "parallel" batch axis shards across
    # both v7x TensorCores; cap tiles at 1024 rows to amortize per-step overhead
    # at large B without growing VMEM past a few MiB.
    return min(_round_up(pl.cdiv(B, 2), 128), 1024)


# ---------------------------------------------------------------------------
# Kernel A: multi-tile path (grid >= 2). All weights/biases are auto-DMA'd with
# constant block indices (fetched once in the prologue, resident across steps).
# ---------------------------------------------------------------------------
def qnet_kernel(x_ref,
                w1_ref, b1_ref, w2_ref, b2_ref, w3_ref, b3_ref, w4_ref, b4_ref,
                o_ref, h_ref):
    # fc1 + ReLU (bf16 x bf16 -> f32 on the MXU; bias/ReLU in f32; store bf16)
    h = jnp.dot(x_ref[...].astype(jnp.bfloat16), w1_ref[...],
                preferred_element_type=jnp.float32)
    h_ref[...] = jnp.maximum(h + b1_ref[...], 0.0).astype(jnp.bfloat16)
    # fc2 + ReLU
    h = jnp.dot(h_ref[...], w2_ref[...], preferred_element_type=jnp.float32)
    h_ref[...] = jnp.maximum(h + b2_ref[...], 0.0).astype(jnp.bfloat16)
    # fc3 + ReLU
    h = jnp.dot(h_ref[...], w3_ref[...], preferred_element_type=jnp.float32)
    h_ref[...] = jnp.maximum(h + b3_ref[...], 0.0).astype(jnp.bfloat16)
    # fc4 (no activation)
    out = jnp.dot(h_ref[...], w4_ref[...], preferred_element_type=jnp.float32)
    o_ref[...] = (out + b4_ref[...]).astype(o_ref.dtype)


# ---------------------------------------------------------------------------
# Kernel B: single-tile path (grid == 1, small-batch / inference regime).
# fc2-fc4 weights stay in HBM (memory_space=pl.ANY) and are streamed into VMEM
# scratch with manual async copies, overlapping the weight DMA with compute.
# ---------------------------------------------------------------------------
def qnet_kernel_streamed(x_ref, w1_ref, b1_ref, b2_ref, b3_ref, b4_ref,
                         w2_hbm, w3_hbm, w4_hbm,
                         o_ref,
                         h_ref, w2_v, w3_v, w4_v, sem):
    # Kick off fc2..fc4 weight fetches; fc1 computes while they are in flight.
    cp2 = pltpu.make_async_copy(w2_hbm, w2_v, sem.at[0]); cp2.start()
    cp3 = pltpu.make_async_copy(w3_hbm, w3_v, sem.at[1]); cp3.start()
    cp4 = pltpu.make_async_copy(w4_hbm, w4_v, sem.at[2]); cp4.start()

    # fc1 + ReLU
    h = jnp.dot(x_ref[...].astype(jnp.bfloat16), w1_ref[...],
                preferred_element_type=jnp.float32)
    h_ref[...] = jnp.maximum(h + b1_ref[...], 0.0).astype(jnp.bfloat16)

    # fc2 + ReLU
    cp2.wait()
    h = jnp.dot(h_ref[...], w2_v[...], preferred_element_type=jnp.float32)
    h_ref[...] = jnp.maximum(h + b2_ref[...], 0.0).astype(jnp.bfloat16)

    # fc3 + ReLU
    cp3.wait()
    h = jnp.dot(h_ref[...], w3_v[...], preferred_element_type=jnp.float32)
    h_ref[...] = jnp.maximum(h + b3_ref[...], 0.0).astype(jnp.bfloat16)

    # fc4 (no activation)
    cp4.wait()
    out = jnp.dot(h_ref[...], w4_v[...], preferred_element_type=jnp.float32)
    o_ref[...] = (out + b4_ref[...]).astype(o_ref.dtype)


@functools.partial(jax.jit, static_argnames=("n_actions", "batch_tile"))
def qnet_forward(x, params, *, n_actions=None, batch_tile=None):
    """x: (B, n_observations) f32. params: bf16 (in,out) weights, f32 (1,out) biases.

    w4/b4 are expected pre-padded to a multiple of 128 output lanes (see
    init_qnet_params); `n_actions` selects the real columns of the result.
    """
    w1, b1 = params["w1"], params["b1"]
    w2, b2 = params["w2"], params["b2"]
    w3, b3 = params["w3"], params["b3"]
    w4, b4 = params["w4"], params["b4"]

    B, n_obs = x.shape
    n_act_pad = w4.shape[1]
    if n_actions is None:
        n_actions = n_act_pad
    assert n_act_pad % LANE == 0, "pre-pad w4/b4 to a multiple of 128 lanes (init_qnet_params)"
    assert b4.shape[1] == n_act_pad and n_actions <= n_act_pad

    if batch_tile is None:
        batch_tile = _pick_batch_tile(B)
    else:
        batch_tile = max(_round_up(int(batch_tile), 128), 128)

    B_pad = _round_up(B, batch_tile)
    if B_pad != B:
        x = jnp.pad(x, ((0, B_pad - B), (0, 0)))
    grid_n = B_pad // batch_tile

    flops = 2 * B_pad * (n_obs * HIDDEN + 2 * HIDDEN * HIDDEN + HIDDEN * n_act_pad)
    bytes_accessed = (
        x.size * x.dtype.itemsize
        + sum(a.size * a.dtype.itemsize for a in (w1, b1, w2, b2, w3, b3, w4, b4))
        + B_pad * n_act_pad * 4)
    cost = pl.CostEstimate(flops=flops, transcendentals=0,
                           bytes_accessed=bytes_accessed)

    full = lambda arr: pl.BlockSpec(arr.shape, lambda i: (0, 0))
    x_spec = pl.BlockSpec((batch_tile, n_obs), lambda i: (i, 0))
    o_spec = pl.BlockSpec((batch_tile, n_act_pad), lambda i: (i, 0))
    out_shape = jax.ShapeDtypeStruct((B_pad, n_act_pad), jnp.float32)

    if grid_n == 1:
        # Small-batch / inference: overlap fc2-fc4 weight DMA with compute.
        out = pl.pallas_call(
            qnet_kernel_streamed,
            out_shape=out_shape,
            grid_spec=pltpu.PrefetchScalarGridSpec(
                num_scalar_prefetch=0,
                grid=(1,),
                in_specs=[
                    x_spec,
                    full(w1), full(b1), full(b2), full(b3), full(b4),
                    pl.BlockSpec(memory_space=pl.ANY),   # w2 stays in HBM
                    pl.BlockSpec(memory_space=pl.ANY),   # w3 stays in HBM
                    pl.BlockSpec(memory_space=pl.ANY),   # w4 stays in HBM
                ],
                out_specs=o_spec,
                scratch_shapes=[
                    pltpu.VMEM((batch_tile, HIDDEN), jnp.bfloat16),  # activations
                    pltpu.VMEM(w2.shape, w2.dtype),
                    pltpu.VMEM(w3.shape, w3.dtype),
                    pltpu.VMEM(w4.shape, w4.dtype),
                    pltpu.SemaphoreType.DMA((3,)),
                ],
            ),
            compiler_params=pltpu.CompilerParams(
                dimension_semantics=("arbitrary",)),
            cost_estimate=cost,
        )(x, w1, b1, b2, b3, b4, w2, w3, w4)
    else:
        # Multi-tile: batch axis is "parallel" (v7x megacore), weights resident.
        out = pl.pallas_call(
            qnet_kernel,
            out_shape=out_shape,
            grid_spec=pltpu.PrefetchScalarGridSpec(
                num_scalar_prefetch=0,
                grid=(grid_n,),
                in_specs=[
                    x_spec,
                    full(w1), full(b1), full(w2), full(b2),
                    full(w3), full(b3), full(w4), full(b4),
                ],
                out_specs=o_spec,
                scratch_shapes=[pltpu.VMEM((batch_tile, HIDDEN), jnp.bfloat16)],
            ),
            compiler_params=pltpu.CompilerParams(
                dimension_semantics=("parallel",)),
            cost_estimate=cost,
        )(x, w1, b1, w2, b2, w3, b3, w4, b4)

    return out[:B, :n_actions]


def init_qnet_params(key, n_observations, n_actions):
    """Deterministic synthetic init. Weights (in,out) bf16, biases (1,out) f32.

    The final layer is pre-padded to a multiple of 128 output lanes here (once),
    so the jitted forward never emits per-call pad ops and the kernel's output
    store is lane-dense / unmasked.
    """
    dims = [(n_observations, HIDDEN), (HIDDEN, HIDDEN), (HIDDEN, HIDDEN), (HIDDEN, n_actions)]
    params = {}
    keys = jax.random.split(key, 2 * len(dims))
    for idx, (fan_in, fan_out) in enumerate(dims):
        kw, kb = keys[2 * idx], keys[2 * idx + 1]
        bound = fan_in ** -0.5  # Kaiming-uniform-ish like torch.nn.Linear default
        w = jax.random.uniform(kw, (fan_in, fan_out), jnp.float32, -bound, bound)
        b = jax.random.uniform(kb, (1, fan_out), jnp.float32, -bound, bound)
        params[f"w{idx + 1}"] = w.astype(jnp.bfloat16)
        params[f"b{idx + 1}"] = b
    n_act_pad = _round_up(n_actions, LANE)
    if n_act_pad != n_actions:
        pad = n_act_pad - n_actions
        params["w4"] = jnp.pad(params["w4"], ((0, 0), (0, pad)))
        params["b4"] = jnp.pad(params["b4"], ((0, 0), (0, pad)))
    return params


def qnet_reference(x, params):
    """Pure-JAX reference with the same bf16-operand / f32-accumulate math."""
    def linear(h, w, b):
        return jnp.dot(h.astype(jnp.bfloat16), w,
                       preferred_element_type=jnp.float32) + b
    h = jnp.maximum(linear(x, params["w1"], params["b1"]), 0.0).astype(jnp.bfloat16)
    h = jnp.maximum(linear(h, params["w2"], params["b2"]), 0.0).astype(jnp.bfloat16)
    h = jnp.maximum(linear(h, params["w3"], params["b3"]), 0.0).astype(jnp.bfloat16)
    return linear(h, params["w4"], params["b4"])


if __name__ == "__main__":
    n_observations = 8
    n_actions = 4

    key = jax.random.PRNGKey(0)
    k_params, k_x1, k_x2 = jax.random.split(key, 3)
    params = init_qnet_params(k_params, n_observations, n_actions)

    # Small-batch / inference path (grid == 1, streamed fc2-fc4 weights).
    x_small = jax.random.normal(k_x1, (2, n_observations), jnp.float32)
    out_small = jax.block_until_ready(qnet_forward(x_small, params, n_actions=n_actions))
    ref_small = qnet_reference(x_small, params)[:, :n_actions]
    assert out_small.shape == (2, n_actions), out_small.shape
    assert jnp.allclose(out_small, ref_small, atol=2e-2, rtol=2e-2), "small-batch mismatch"

    # Multi-tile path (grid >= 2, megacore-parallel batch axis, resident weights).
    x_big = jax.random.normal(k_x2, (320, n_observations), jnp.float32)
    out_big = jax.block_until_ready(qnet_forward(x_big, params, n_actions=n_actions))
    ref_big = qnet_reference(x_big, params)[:, :n_actions]
    assert out_big.shape == (320, n_actions), out_big.shape
    assert jnp.allclose(out_big, ref_big, atol=2e-2, rtol=2e-2), "multi-tile mismatch"

    print("KERNEL_OK")
</pallas_src>

<mosaic_0001>
module attributes {stable_mosaic.version = 11 : i64} {
  func.func @qnet_kernel_streamed(%arg0: i32, %arg1: memref<128x8xf32, #tpu.memory_space<vmem>>, %arg2: memref<8x512xbf16, #tpu.memory_space<vmem>>, %arg3: memref<1x512xf32, #tpu.memory_space<vmem>>, %arg4: memref<1x512xf32, #tpu.memory_space<vmem>>, %arg5: memref<1x512xf32, #tpu.memory_space<vmem>>, %arg6: memref<1x128xf32, #tpu.memory_space<vmem>>, %arg7: memref<512x512xbf16, #tpu.memory_space<any>>, %arg8: memref<512x512xbf16, #tpu.memory_space<any>>, %arg9: memref<512x128xbf16, #tpu.memory_space<any>>, %arg10: memref<128x128xf32, #tpu.memory_space<vmem>>, %arg11: memref<128x512xbf16, #tpu.memory_space<vmem>>, %arg12: memref<512x512xbf16, #tpu.memory_space<vmem>>, %arg13: memref<512x512xbf16, #tpu.memory_space<vmem>>, %arg14: memref<512x128xbf16, #tpu.memory_space<vmem>>, %arg15: memref<3x!tpu.dma_semaphore, #tpu.memory_space<semaphore_mem>>) attributes {dimension_semantics = [#tpu.dimension_semantics<arbitrary>], iteration_bounds = array<i64: 1>, scalar_prefetch = 0 : i64, scratch_operands = 5 : i64, tpu.core_type = #tpu.core_type<tc>, window_params = [{transform_indices = @transform_0, window_bounds = array<i64: 128, 8>}, {pipeline_mode = #tpu.pipeline_mode<synchronous>, transform_indices = @transform_1, window_bounds = array<i64: 8, 512>}, {pipeline_mode = #tpu.pipeline_mode<synchronous>, transform_indices = @transform_2, window_bounds = array<i64: 1, 512>}, {pipeline_mode = #tpu.pipeline_mode<synchronous>, transform_indices = @transform_3, window_bounds = array<i64: 1, 512>}, {pipeline_mode = #tpu.pipeline_mode<synchronous>, transform_indices = @transform_4, window_bounds = array<i64: 1, 512>}, {pipeline_mode = #tpu.pipeline_mode<synchronous>, transform_indices = @transform_5, window_bounds = array<i64: 1, 128>}, {}, {}, {}, {transform_indices = @transform_9, window_bounds = array<i64: 128, 128>}]} {
    %c0_i32 = arith.constant 0 : i32
    %0 = tpu.memref_slice %arg15[%c0_i32] : memref<3x!tpu.dma_semaphore, #tpu.memory_space<semaphore_mem>> -> memref<1x!tpu.dma_semaphore, #tpu.memory_space<semaphore_mem>>
    %1 = tpu.memref_squeeze %0 : memref<1x!tpu.dma_semaphore, #tpu.memory_space<semaphore_mem>> -> memref<!tpu.dma_semaphore, #tpu.memory_space<semaphore_mem>>
    tpu.enqueue_dma source(%arg7 : memref<512x512xbf16, #tpu.memory_space<any>>) target(%arg12 : memref<512x512xbf16, #tpu.memory_space<vmem>>) target_semaphore(%1 : memref<!tpu.dma_semaphore, #tpu.memory_space<semaphore_mem>>)
    %c1_i32 = arith.constant 1 : i32
    %2 = tpu.memref_slice %arg15[%c1_i32] : memref<3x!tpu.dma_semaphore, #tpu.memory_space<semaphore_mem>> -> memref<1x!tpu.dma_semaphore, #tpu.memory_space<semaphore_mem>>
    %3 = tpu.memref_squeeze %2 : memref<1x!tpu.dma_semaphore, #tpu.memory_space<semaphore_mem>> -> memref<!tpu.dma_semaphore, #tpu.memory_space<semaphore_mem>>
    tpu.enqueue_dma source(%arg8 : memref<512x512xbf16, #tpu.memory_space<any>>) target(%arg13 : memref<512x512xbf16, #tpu.memory_space<vmem>>) target_semaphore(%3 : memref<!tpu.dma_semaphore, #tpu.memory_space<semaphore_mem>>)
    %c2_i32 = arith.constant 2 : i32
    %4 = tpu.memref_slice %arg15[%c2_i32] : memref<3x!tpu.dma_semaphore, #tpu.memory_space<semaphore_mem>> -> memref<1x!tpu.dma_semaphore, #tpu.memory_space<semaphore_mem>>
    %5 = tpu.memref_squeeze %4 : memref<1x!tpu.dma_semaphore, #tpu.memory_space<semaphore_mem>> -> memref<!tpu.dma_semaphore, #tpu.memory_space<semaphore_mem>>
    tpu.enqueue_dma source(%arg9 : memref<512x128xbf16, #tpu.memory_space<any>>) target(%arg14 : memref<512x128xbf16, #tpu.memory_space<vmem>>) target_semaphore(%5 : memref<!tpu.dma_semaphore, #tpu.memory_space<semaphore_mem>>)
    %c0 = arith.constant 0 : index
    %c0_0 = arith.constant 0 : index
    %6 = vector.load %arg1[%c0, %c0_0] : memref<128x8xf32, #tpu.memory_space<vmem>>, vector<128x8xf32>
    %7 = arith.truncf %6 : vector<128x8xf32> to vector<128x8xbf16>
    %c0_1 = arith.constant 0 : index
    %c0_2 = arith.constant 0 : index
    %8 = vector.load %arg2[%c0_1, %c0_2] : memref<8x512xbf16, #tpu.memory_space<vmem>>, vector<8x512xbf16>
    %cst = arith.constant dense<0.000000e+00> : vector<128x512xf32>
    %9 = tpu.matmul %7, %8, %cst {dimension_numbers = #tpu.dot_dimension_numbers<[1], [0], [0], [1], [0, 0, 1, 1], [], []>} : vector<128x8xbf16>, vector<8x512xbf16>, vector<128x512xf32> -> vector<128x512xf32>
    %c0_3 = arith.constant 0 : index
    %c0_4 = arith.constant 0 : index
    %10 = vector.load %arg3[%c0_3, %c0_4] : memref<1x512xf32, #tpu.memory_space<vmem>>, vector<1x512xf32>
    %11 = vector.broadcast %10 : vector<1x512xf32> to vector<128x512xf32>
    %12 = arith.addf %9, %11 : vector<128x512xf32>
    %cst_5 = arith.constant 0.000000e+00 : f32
    %13 = vector.broadcast %cst_5 : f32 to vector<128x512xf32>
    %14 = arith.maximumf %12, %13 : vector<128x512xf32>
    %15 = arith.truncf %14 : vector<128x512xf32> to vector<128x512xbf16>
    %c0_6 = arith.constant 0 : index
    %c0_7 = arith.constant 0 : index
    %16 = vector.load %arg11[%c0_6, %c0_7] : memref<128x512xbf16, #tpu.memory_space<vmem>>, vector<128x512xbf16>
    tpu.vector_store %arg11[%c0_6, %c0_7], %15 {strides = array<i32>} : memref<128x512xbf16, #tpu.memory_space<vmem>>, vector<128x512xbf16>,
    %c0_i32_8 = arith.constant 0 : i32
    %17 = tpu.memref_slice %arg15[%c0_i32_8] : memref<3x!tpu.dma_semaphore, #tpu.memory_space<semaphore_mem>> -> memref<1x!tpu.dma_semaphore, #tpu.memory_space<semaphore_mem>>
    %18 = tpu.memref_squeeze %17 : memref<1x!tpu.dma_semaphore, #tpu.memory_space<semaphore_mem>> -> memref<!tpu.dma_semaphore, #tpu.memory_space<semaphore_mem>>
    tpu.wait_dma2 semaphore(%18 : memref<!tpu.dma_semaphore, #tpu.memory_space<semaphore_mem>>) src(%arg7 : memref<512x512xbf16, #tpu.memory_space<any>>) dst(%arg12 : memref<512x512xbf16, #tpu.memory_space<vmem>>)
    %c0_9 = arith.constant 0 : index
    %c0_10 = arith.constant 0 : index
    %19 = vector.load %arg11[%c0_9, %c0_10] : memref<128x512xbf16, #tpu.memory_space<vmem>>, vector<128x512xbf16>
    %c0_11 = arith.constant 0 : index
    %c0_12 = arith.constant 0 : index
    %20 = vector.load %arg12[%c0_11, %c0_12] : memref<512x512xbf16, #tpu.memory_space<vmem>>, vector<512x512xbf16>
    %cst_13 = arith.constant dense<0.000000e+00> : vector<128x512xf32>
    %21 = tpu.matmul %19, %20, %cst_13 {dimension_numbers = #tpu.dot_dimension_numbers<[1], [0], [0], [1], [0, 0, 1, 1], [], []>} : vector<128x512xbf16>, vector<512x512xbf16>, vector<128x512xf32> -> vector<128x512xf32>
    %c0_14 = arith.constant 0 : index
    %c0_15 = arith.constant 0 : index
    %22 = vector.load %arg4[%c0_14, %c0_15] : memref<1x512xf32, #tpu.memory_space<vmem>>, vector<1x512xf32>
    %23 = vector.broadcast %22 : vector<1x512xf32> to vector<128x512xf32>
    %24 = arith.addf %21, %23 : vector<128x512xf32>
    %cst_16 = arith.constant 0.000000e+00 : f32
    %25 = vector.broadcast %cst_16 : f32 to vector<128x512xf32>
    %26 = arith.maximumf %24, %25 : vector<128x512xf32>
    %27 = arith.truncf %26 : vector<128x512xf32> to vector<128x512xbf16>
    %c0_17 = arith.constant 0 : index
    %c0_18 = arith.constant 0 : index
    %28 = vector.load %arg11[%c0_17, %c0_18] : memref<128x512xbf16, #tpu.memory_space<vmem>>, vector<128x512xbf16>
    tpu.vector_store %arg11[%c0_17, %c0_18], %27 {strides = array<i32>} : memref<128x512xbf16, #tpu.memory_space<vmem>>, vector<128x512xbf16>,
    %c1_i32_19 = arith.constant 1 : i32
    %29 = tpu.memref_slice %arg15[%c1_i32_19] : memref<3x!tpu.dma_semaphore, #tpu.memory_space<semaphore_mem>> -> memref<1x!tpu.dma_semaphore, #tpu.memory_space<semaphore_mem>>
    %30 = tpu.memref_squeeze %29 : memref<1x!tpu.dma_semaphore, #tpu.memory_space<semaphore_mem>> -> memref<!tpu.dma_semaphore, #tpu.memory_space<semaphore_mem>>
    tpu.wait_dma2 semaphore(%30 : memref<!tpu.dma_semaphore, #tpu.memory_space<semaphore_mem>>) src(%arg8 : memref<512x512xbf16, #tpu.memory_space<any>>) dst(%arg13 : memref<512x512xbf16, #tpu.memory_space<vmem>>)
    %c0_20 = arith.constant 0 : index
    %c0_21 = arith.constant 0 : index
    %31 = vector.load %arg11[%c0_20, %c0_21] : memref<128x512xbf16, #tpu.memory_space<vmem>>, vector<128x512xbf16>
    %c0_22 = arith.constant 0 : index
    %c0_23 = arith.constant 0 : index
    %32 = vector.load %arg13[%c0_22, %c0_23] : memref<512x512xbf16, #tpu.memory_space<vmem>>, vector<512x512xbf16>
    %cst_24 = arith.constant dense<0.000000e+00> : vector<128x512xf32>
    %33 = tpu.matmul %31, %32, %cst_24 {dimension_numbers = #tpu.dot_dimension_numbers<[1], [0], [0], [1], [0, 0, 1, 1], [], []>} : vector<128x512xbf16>, vector<512x512xbf16>, vector<128x512xf32> -> vector<128x512xf32>
    %c0_25 = arith.constant 0 : index
    %c0_26 = arith.constant 0 : index
    %34 = vector.load %arg5[%c0_25, %c0_26] : memref<1x512xf32, #tpu.memory_space<vmem>>, vector<1x512xf32>
    %35 = vector.broadcast %34 : vector<1x512xf32> to vector<128x512xf32>
    %36 = arith.addf %33, %35 : vector<128x512xf32>
    %cst_27 = arith.constant 0.000000e+00 : f32
    %37 = vector.broadcast %cst_27 : f32 to vector<128x512xf32>
    %38 = arith.maximumf %36, %37 : vector<128x512xf32>
    %39 = arith.truncf %38 : vector<128x512xf32> to vector<128x512xbf16>
    %c0_28 = arith.constant 0 : index
    %c0_29 = arith.constant 0 : index
    %40 = vector.load %arg11[%c0_28, %c0_29] : memref<128x512xbf16, #tpu.memory_space<vmem>>, vector<128x512xbf16>
    tpu.vector_store %arg11[%c0_28, %c0_29], %39 {strides = array<i32>} : memref<128x512xbf16, #tpu.memory_space<vmem>>, vector<128x512xbf16>,
    %c2_i32_30 = arith.constant 2 : i32
    %41 = tpu.memref_slice %arg15[%c2_i32_30] : memref<3x!tpu.dma_semaphore, #tpu.memory_space<semaphore_mem>> -> memref<1x!tpu.dma_semaphore, #tpu.memory_space<semaphore_mem>>
    %42 = tpu.memref_squeeze %41 : memref<1x!tpu.dma_semaphore, #tpu.memory_space<semaphore_mem>> -> memref<!tpu.dma_semaphore, #tpu.memory_space<semaphore_mem>>
    tpu.wait_dma2 semaphore(%42 : memref<!tpu.dma_semaphore, #tpu.memory_space<semaphore_mem>>) src(%arg9 : memref<512x128xbf16, #tpu.memory_space<any>>) dst(%arg14 : memref<512x128xbf16, #tpu.memory_space<vmem>>)
    %c0_31 = arith.constant 0 : index
    %c0_32 = arith.constant 0 : index
    %43 = vector.load %arg11[%c0_31, %c0_32] : memref<128x512xbf16, #tpu.memory_space<vmem>>, vector<128x512xbf16>
    %c0_33 = arith.constant 0 : index
    %c0_34 = arith.constant 0 : index
    %44 = vector.load %arg14[%c0_33, %c0_34] : memref<512x128xbf16, #tpu.memory_space<vmem>>, vector<512x128xbf16>
    %cst_35 = arith.constant dense<0.000000e+00> : vector<128x128xf32>
    %45 = tpu.matmul %43, %44, %cst_35 {dimension_numbers = #tpu.dot_dimension_numbers<[1], [0], [0], [1], [0, 0, 1, 1], [], []>} : vector<128x512xbf16>, vector<512x128xbf16>, vector<128x128xf32> -> vector<128x128xf32>
    %c0_36 = arith.constant 0 : index
    %c0_37 = arith.constant 0 : index
    %46 = vector.load %arg6[%c0_36, %c0_37] : memref<1x128xf32, #tpu.memory_space<vmem>>, vector<1x128xf32>
    %47 = vector.broadcast %46 : vector<1x128xf32> to vector<128x128xf32>
    %48 = arith.addf %45, %47 : vector<128x128xf32>
    %c0_38 = arith.constant 0 : index
    %c0_39 = arith.constant 0 : index
    %49 = vector.load %arg10[%c0_38, %c0_39] : memref<128x128xf32, #tpu.memory_space<vmem>>, vector<128x128xf32>
    tpu.vector_store %arg10[%c0_38, %c0_39], %48 {strides = array<i32>} : memref<128x128xf32, #tpu.memory_space<vmem>>, vector<128x128xf32>,
    return
  }
  func.func @transform_0(%arg0: i32) -> (i32, i32) {
    %c0_i32 = arith.constant 0 : i32
    %c0_i32_0 = arith.constant 0 : i32
    return %arg0, %c0_i32 : i32, i32
  }
  func.func @transform_1(%arg0: i32) -> (i32, i32) {
    %c0_i32 = arith.constant 0 : i32
    %c0_i32_0 = arith.constant 0 : i32
    %c0_i32_1 = arith.constant 0 : i32
    return %c0_i32, %c0_i32_0 : i32, i32
  }
  func.func @transform_2(%arg0: i32) -> (i32, i32) {
    %c0_i32 = arith.constant 0 : i32
    %c0_i32_0 = arith.constant 0 : i32
    %c0_i32_1 = arith.constant 0 : i32
    return %c0_i32, %c0_i32_0 : i32, i32
  }
  func.func @transform_3(%arg0: i32) -> (i32, i32) {
    %c0_i32 = arith.constant 0 : i32
    %c0_i32_0 = arith.constant 0 : i32
    %c0_i32_1 = arith.constant 0 : i32
    return %c0_i32, %c0_i32_0 : i32, i32
  }
  func.func @transform_4(%arg0: i32) -> (i32, i32) {
    %c0_i32 = arith.constant 0 : i32
    %c0_i32_0 = arith.constant 0 : i32
    %c0_i32_1 = arith.constant 0 : i32
    return %c0_i32, %c0_i32_0 : i32, i32
  }
  func.func @transform_5(%arg0: i32) -> (i32, i32) {
    %c0_i32 = arith.constant 0 : i32
    %c0_i32_0 = arith.constant 0 : i32
    %c0_i32_1 = arith.constant 0 : i32
    return %c0_i32, %c0_i32_0 : i32, i32
  }
  func.func @transform_9(%arg0: i32) -> (i32, i32) {
    %c0_i32 = arith.constant 0 : i32
    %c0_i32_0 = arith.constant 0 : i32
    return %arg0, %c0_i32 : i32, i32
  }
}

</mosaic_0001>

<bundles_post_ra>
// kernel: qnet_forward.1
= control target key start
LH: loop header
LB: loop body
LE: loop exit
PB: predicated region body
PF: predicated region fallthrough
CT: control target
= control target key end

     0   :  { %s31_s30 = sld [smem:[#allocation0]]   ;;  %s2857_s10 = smov [#allocation3]   ;;  %v2858_v0 = vmov 0   ;;  %vm192_vm0 = vcmask 1043456   ;;  %vm167_vm1 = vcmask 64512   ;;  %s3691_s0 = inlined_call_operand.vmem [shape: f32[128,8], index: 0, kind: input, shape index: {}]   ;;  %s3692_s1 = inlined_call_operand.vmem [shape: bf16[8,512], index: 1, kind: input, shape index: {}]   ;;  %s3693_s2 = inlined_call_operand.vmem [shape: f32[1,512], index: 2, kind: input, shape index: {}]   ;;  %s3694_s3 = inlined_call_operand.vmem [shape: f32[1,512], index: 3, kind: input, shape index: {}]   ;;  %s3695_s4 = inlined_call_operand.vmem [shape: f32[1,512], index: 4, kind: input, shape index: {}]   ;;  %s3696_s5 = inlined_call_operand.vmem [shape: f32[1,128], index: 5, kind: input, shape index: {}]   ;;  %s3697_s6 = inlined_call_operand.hbm [shape: bf16[512,512], index: 6, kind: input, shape index: {}]   ;;  %s3698_s7 = inlined_call_operand.hbm [shape: bf16[512,512], index: 7, kind: input, shape index: {}]   ;;  %s3699_s8 = inlined_call_operand.hbm [shape: bf16[512,128], index: 8, kind: input, shape index: {}]   ;;  %s3700_s9 = inlined_call_operand.vmem [shape: f32[128,128], index: 9, kind: output, shape index: {}]  }
   0x1   :  { %s39_s11 = sshll.u32 %s2857_s10, 4  ;;  %237 = vmatprep.mubr.bf16.mxu0 %v2858_v0  ;;  %350 = vmatprep.mubr.bf16.mxu1 %v2858_v0  ;;  %s2859_s12 = smov 512   ;;  %s40_s11 = int_to_ptr.vmem [resolvable:$true] %s39_s11 }
   0x2   :  { %43 = sst [smem:[#allocation8]] %s2859_s12  ;;  %s2860_s13 = smov 4  }
   0x3   :  { %45 = sst [smem:[#allocation8 + $0x1]] %s2859_s12  ;;  %s2861_s14 = smov 64  }
   0x4   :  { %47 = sst [smem:[#allocation8 + $0x2]] %s2860_s13  ;;  %s2862_s16 = smov 128  }
   0x5   :  { %49 = sst [smem:[#allocation8 + $0x3]] %s2861_s14  ;;  %s2863_s18 = smov 2  }
   0x6   :  { %s2397_s15 = sshll.u32 %s31_s30, 26  ;;  %51 = sst [smem:[#allocation8 + $0x4]] %s2862_s16 }
   0x7   :  { %s2398_s17 = sadd.s32 134217728, %s2397_s15  ;;  %53 = sst [smem:[#allocation8 + $0x5]] %s2863_s18 }
   0x8   :  { %s2864_s19 = smov 256   ;;  %57 = sst [smem:[#allocation8 + $0x7]] %s2861_s14 }
   0x9   :  { %55 = sst [smem:[#allocation8 + $0x6]] %s2864_s19  ;;  %s2865_s20 = smov [#allocation6]  }
   0xa   :  { %59 = sst [smem:[#allocation8 + $0x8]] %s2860_s13  ;;  %s2866_s21 = smov [#allocation7]  }
   0xb   :  { %61 = dma.general %s3697_s6, 16384, %s40_s11, %s2865_s20, %s2866_s21, [#allocation8], %s2398_s17, 0  }
   0xc   :  { %78 = sst [smem:[#allocation10]] %s2859_s12  ;;  %s2867_s24 = smov [#allocation4]  }
   0xd   :  { %80 = sst [smem:[#allocation10 + $0x1]] %s2859_s12  ;;  %s74_s25 = sshll.u32 %s2867_s24, 4  ;;  %s75_s25 = int_to_ptr.vmem [resolvable:$true] %s74_s25 }
   0xe   :  { %82 = sst [smem:[#allocation10 + $0x2]] %s2860_s13  ;;  %s2868_s26 = smov [#allocation6 + $0x1]  }
   0xf   :  { %84 = sst [smem:[#allocation10 + $0x3]] %s2861_s14  ;;  %s2869_s27 = smov [#allocation9]  }
  0x10   :  { %86 = sst [smem:[#allocation10 + $0x4]] %s2862_s16  ;;  %s2829_s22 = scalar_lea.hbm %s3699_s8, 4096 }
  0x11   :  { %88 = sst [smem:[#allocation10 + $0x5]] %s2863_s18  ;;  %s2870_s18 = smov [#allocation5]  }
  0x12   :  { %90 = sst [smem:[#allocation10 + $0x6]] %s2864_s19  ;;  %s105_s19 = sshll.u32 %s2870_s18, 4  ;;  %s106_s19 = int_to_ptr.vmem [resolvable:$true] %s105_s19 }
  0x13   :  { %92 = sst [smem:[#allocation10 + $0x7]] %s2861_s14  ;;  %p2830_p0 = scmp.ne.s32.totalorder %s3699_s8, %s2829_s22 }
  0x14   :  { %94 = sst [smem:[#allocation10 + $0x8]] %s2860_s13  ;;  %p2833_p1 = scmp.lt.u32.totalorder %s2829_s22, %s3699_s8 }
  0x15   :  { %96 = dma.general %s3698_s7, 16384, %s75_s25, %s2868_s26, %s2869_s27, [#allocation10], %s2398_s17, 0  }
  0x16   :  { %v133_v1 = vld [vmem:[%s3692_s1] sm:$0xff]  ;;  %v134_v2 = vld [vmem:[%s3692_s1 + $0x8] sm:$0xff]  ;;  %v111_v12 = vld [vmem:[%s3691_s0 + $0x10] sm:$0xff]  ;;  %p2835_p2 = pnand %p2833_p1, %p2830_p0 }
  0x17   :  { %v109_v3 = vld [vmem:[%s3691_s0] sm:$0xff]  ;;  %v2402_v4 = vcombine.high %v133_v1, %v133_v1  ;;  %v2404_v5 = vcombine.high %v134_v2, %v134_v2  ;;  %v2401_v6 = vcombine.low %v133_v1, %v133_v1  ;;  %v2403_v7 = vcombine.low %v134_v2, %v134_v2  ;;  %v110_v8 = vld [vmem:[%s3691_s0 + $0x8] sm:$0xff]  ;;  %v112_v13 = vld [vmem:[%s3691_s0 + $0x18] sm:$0xff] }
  0x18   :  { %v125_v11 = vpack.c.bf16 %v110_v8, %v109_v3  ;;  %v126_v14 = vpack.c.bf16 %v112_v13, %v111_v12  ;;  %v113_v15 = vld [vmem:[%s3691_s0 + $0x20] sm:$0xff]  ;;  %v114_v16 = vld [vmem:[%s3691_s0 + $0x28] sm:$0xff]  ;;  %v115_v18 = vld [vmem:[%s3691_s0 + $0x30] sm:$0xff] }
  0x19   :  { %2405 = vmatprep.subr.msk.bf16.mxu0 %vm192_vm0, %v2402_v4  ;;  %2414 = vmatprep.subr.msk.bf16.mxu1 %vm192_vm0, %v2404_v5  ;;  %v194_v9 = vsel %vm192_vm0, %v2401_v6, 0  ;;  %v200_v10 = vsel %vm192_vm0, %v2403_v7, 0  ;;  %v127_v17 = vpack.c.bf16 %v114_v16, %v113_v15  ;;  %v116_v19 = vld [vmem:[%s3691_s0 + $0x38] sm:$0xff]  ;;  %v117_v21 = vld [vmem:[%s3691_s0 + $0x40] sm:$0xff]  ;;  %v118_v22 = vld [vmem:[%s3691_s0 + $0x48] sm:$0xff] }
  0x1a   :  { %206 = vmatpush1.bf16.msra.mxu0 %v194_v9  ;;  %319 = vmatpush1.bf16.msra.mxu1 %v200_v10  ;;  %v128_v20 = vpack.c.bf16 %v116_v19, %v115_v18  ;;  %v129_v23 = vpack.c.bf16 %v118_v22, %v117_v21  ;;  %v119_v24 = vld [vmem:[%s3691_s0 + $0x50] sm:$0xff]  ;;  %v120_v25 = vld [vmem:[%s3691_s0 + $0x58] sm:$0xff]  ;;  %v121_v27 = vld [vmem:[%s3691_s0 + $0x60] sm:$0xff] }
  0x1b   :  { %v130_v26 = vpack.c.bf16 %v120_v25, %v119_v24  ;;  %v122_v28 = vld [vmem:[%s3691_s0 + $0x68] sm:$0xff]  ;;  %v123_v30 = vld [vmem:[%s3691_s0 + $0x70] sm:$0xff]  ;;  %v124_v31 = vld [vmem:[%s3691_s0 + $0x78] sm:$0xff] }
  0x1c   :  { %v131_v29 = vpack.c.bf16 %v122_v28, %v121_v27  ;;  %v132_v32 = vpack.c.bf16 %v124_v31, %v123_v30 }
  0x1d   :  { %2406 = vmatmul.mubr.msk.bf16.vlgmr.msra.gmra.mrb[0].mxu0 %vm167_vm1, %v125_v11  ;;  %2415 = vmatmul.mubr.msk.bf16.vlgmr.msra.gmra.mrb[0].mxu1 %vm167_vm1, %v125_v11 }
  0x1e   :  { %247 = vmatprep.mubr.bf16.mxu0 %v2858_v0  ;;  %360 = vmatprep.mubr.bf16.mxu1 %v2858_v0 }
  0x25   :  { %2407 = vmatmul.mubr.msk.bf16.gmra.mrb[4].mxu0 %vm167_vm1, %v126_v14  ;;  %2416 = vmatmul.mubr.msk.bf16.gmra.mrb[4].mxu1 %vm167_vm1, %v126_v14 }
  0x26   :  { %257 = vmatprep.mubr.bf16.mxu0 %v2858_v0  ;;  %370 = vmatprep.mubr.bf16.mxu1 %v2858_v0 }
  0x2d   :  { %2408 = vmatmul.mubr.msk.bf16.gmra.mrb[8].mxu0 %vm167_vm1, %v127_v17  ;;  %2417 = vmatmul.mubr.msk.bf16.gmra.mrb[8].mxu1 %vm167_vm1, %v127_v17 }
  0x2e   :  { %267 = vmatprep.mubr.bf16.mxu0 %v2858_v0  ;;  %380 = vmatprep.mubr.bf16.mxu1 %v2858_v0 }
  0x35   :  { %2409 = vmatmul.mubr.msk.bf16.gmra.mrb[12].mxu0 %vm167_vm1, %v128_v20  ;;  %2418 = vmatmul.mubr.msk.bf16.gmra.mrb[12].mxu1 %vm167_vm1, %v128_v20 }
  0x36   :  { %277 = vmatprep.mubr.bf16.mxu0 %v2858_v0  ;;  %390 = vmatprep.mubr.bf16.mxu1 %v2858_v0 }
  0x3d   :  { %2410 = vmatmul.mubr.msk.bf16.gmra.mrb[16].mxu0 %vm167_vm1, %v129_v23  ;;  %2419 = vmatmul.mubr.msk.bf16.gmra.mrb[16].mxu1 %vm167_vm1, %v129_v23 }
  0x3e   :  { %287 = vmatprep.mubr.bf16.mxu0 %v2858_v0  ;;  %400 = vmatprep.mubr.bf16.mxu1 %v2858_v0 }
  0x45   :  { %2411 = vmatmul.mubr.msk.bf16.gmra.mrb[20].mxu0 %vm167_vm1, %v130_v26  ;;  %2420 = vmatmul.mubr.msk.bf16.gmra.mrb[20].mxu1 %vm167_vm1, %v130_v26 }
  0x46   :  { %297 = vmatprep.mubr.bf16.mxu0 %v2858_v0  ;;  %410 = vmatprep.mubr.bf16.mxu1 %v2858_v0 }
  0x4d   :  { %2412 = vmatmul.mubr.msk.bf16.gmra.mrb[24].mxu0 %vm167_vm1, %v131_v29  ;;  %2421 = vmatmul.mubr.msk.bf16.gmra.mrb[24].mxu1 %vm167_vm1, %v131_v29 }
  0x4e   :  { %307 = vmatprep.mubr.bf16.mxu0 %v2858_v0  ;;  %420 = vmatprep.mubr.bf16.mxu1 %v2858_v0 }
  0x55   :  { %2413 = vmatmul.mubr.msk.bf16.gmra.mrb[28].mxu0 %vm167_vm1, %v132_v32  ;;  %2422 = vmatmul.mubr.msk.bf16.gmra.mrb[28].mxu1 %vm167_vm1, %v132_v32 }
  0x56   :  { %2838 = shalt.err (!%p2835_p2)  }
  0x57   :  { %s2839_s0 = scalar_lea.vmem %s106_s19, 4096  ;;  %p2844_p4 = scmp.lt.s32.totalorder %s106_s19, %s106_s19 }
  0x58   :  { %p2840_p3 = scmp.ne.s32.totalorder %s106_s19, %s2839_s0  ;;  %p2845_p5 = scmp.lt.s32.totalorder %s2839_s0, %s2839_s0 }
  0x5a   :  { %p2846_p6 = por %p2845_p5, %p2844_p4 }
  0x5c   :  { %p2847_p7 = pnand %p2846_p6, %p2840_p3 }
  0x5e   :  { %2850 = shalt.err (!%p2847_p7)  }
  0x5f   :  { %108 = dma.hbm_to_vmem [thread:$0]  %s3699_s8, 4096, %s106_s19, [#allocation6 + $0x2]  ;;  %v137_v33 = vlaneseq  ;;  %v135_v37 = vld [vmem:[%s3693_s2] sm:$0xf] }
  0x61   :  { %v138_v34 = vshrl.u32 %v137_v33, 7 }
  0x63   :  { %v3025_v35 = vsub.s32 0, %v138_v34  ;;  %v3027_v36 = vsub.s32 2, %v138_v34  ;;  %v3032_v38 = vsub.s32 1, %v138_v34  ;;  %v3034_v39 = vsub.s32 3, %v138_v34 }
  0x65   :  { %v3037_v40 = vrot.slane %v135_v37, %v3025_v35  ;;  %v3040_v41 = vrot.slane %v135_v37, %v3027_v36  ;;  %v3043_v42 = vrot.slane %v135_v37, %v3032_v38  ;;  %v3046_v43 = vrot.slane %v135_v37, %v3034_v39 }
  0xf0   :  { %v239_v44 = vpop.f32.mrb[0].mxu0  ;;  %v352_v45 = vpop.f32.mrb[0].mxu1 }
  0xf1   :  { %v240_v46 = vadd.f32 %v239_v44, %v3037_v40  ;;  %v353_v47 = vadd.f32 %v352_v45, %v3040_v41  ;;  %v241_v48 = vpop.f32.mrb[1].mxu0  ;;  %v354_v49 = vpop.f32.mrb[1].mxu1 }
  0xf2   :  { %v242_v50 = vadd.f32 %v241_v48, %v3043_v42  ;;  %v355_v51 = vadd.f32 %v354_v49, %v3046_v43  ;;  %v243_v52 = vpop.f32.mrb[2].mxu0  ;;  %v356_v53 = vpop.f32.mrb[2].mxu1 }
  0xf3   :  { %v244_v54 = vadd.f32 %v243_v52, %v3037_v40  ;;  %v357_v55 = vadd.f32 %v356_v53, %v3040_v41  ;;  %v245_v56 = vpop.f32.mrb[3].mxu0  ;;  %v358_v57 = vpop.f32.mrb[3].mxu1  ;;  %v431_v60 = vmax.f32 %v240_v46, 0.0  ;;  %v433_v61 = vmax.f32 %v353_v47, 0.0 }
  0xf4   :  { %v246_v58 = vadd.f32 %v245_v56, %v3043_v42  ;;  %v359_v59 = vadd.f32 %v358_v57, %v3046_v43  ;;  %v432_v0 = vmax.f32 %v242_v50, 0.0  ;;  %v434_v1 = vmax.f32 %v355_v51, 0.0 }
  0xf5   :  { %v435_v62 = vmax.f32 %v244_v54, 0.0  ;;  %v437_v63 = vmax.f32 %v357_v55, 0.0 }
  0xf6   :  { %v436_v2 = vmax.f32 %v246_v58, 0.0  ;;  %v438_v3 = vmax.f32 %v359_v59, 0.0 }
  0xf7   :  { %v3056_v4 = vpack.c.bf16 %v435_v62, %v431_v60  ;;  %v3058_v5 = vpack.c.bf16 %v437_v63, %v433_v61 }
  0xf8   :  { %v3060_v6 = vpack.c.bf16 %v436_v2, %v432_v0  ;;  %v3062_v7 = vpack.c.bf16 %v438_v3, %v434_v1  ;;  %v249_v8 = vpop.f32.mrb[4].mxu0  ;;  %v362_v9 = vpop.f32.mrb[4].mxu1 }
  0xf9   :  { %v250_v10 = vadd.f32 %v249_v8, %v3037_v40  ;;  %v363_v11 = vadd.f32 %v362_v9, %v3040_v41  ;;  %v251_v12 = vpop.f32.mrb[5].mxu0  ;;  %v364_v13 = vpop.f32.mrb[5].mxu1 }
  0xfa   :  { %v252_v14 = vadd.f32 %v251_v12, %v3043_v42  ;;  %v365_v15 = vadd.f32 %v364_v13, %v3046_v43  ;;  %v253_v16 = vpop.f32.mrb[6].mxu0  ;;  %v366_v17 = vpop.f32.mrb[6].mxu1 }
  0xfb   :  { %v254_v18 = vadd.f32 %v253_v16, %v3037_v40  ;;  %v367_v19 = vadd.f32 %v366_v17, %v3040_v41  ;;  %v255_v20 = vpop.f32.mrb[7].mxu0  ;;  %v368_v21 = vpop.f32.mrb[7].mxu1  ;;  %v439_v24 = vmax.f32 %v250_v10, 0.0  ;;  %v441_v25 = vmax.f32 %v363_v11, 0.0 }
  0xfc   :  { %v256_v22 = vadd.f32 %v255_v20, %v3043_v42  ;;  %v369_v23 = vadd.f32 %v368_v21, %v3046_v43  ;;  %v440_v28 = vmax.f32 %v252_v14, 0.0  ;;  %v442_v29 = vmax.f32 %v365_v15, 0.0 }
  0xfd   :  { %v443_v26 = vmax.f32 %v254_v18, 0.0  ;;  %v445_v27 = vmax.f32 %v367_v19, 0.0 }
  0xfe   :  { %v444_v30 = vmax.f32 %v256_v22, 0.0  ;;  %v446_v31 = vmax.f32 %v369_v23, 0.0 }
  0xff   :  { %v3072_v32 = vpack.c.bf16 %v443_v26, %v439_v24  ;;  %v3074_v33 = vpack.c.bf16 %v445_v27, %v441_v25 }
 0x100   :  { %v3076_v34 = vpack.c.bf16 %v444_v30, %v440_v28  ;;  %v3078_v37 = vpack.c.bf16 %v446_v31, %v442_v29  ;;  %v259_v44 = vpop.f32.mrb[8].mxu0  ;;  %v372_v45 = vpop.f32.mrb[8].mxu1 }
 0x101   :  { %v260_v46 = vadd.f32 %v259_v44, %v3037_v40  ;;  %v373_v47 = vadd.f32 %v372_v45, %v3040_v41  ;;  %v261_v48 = vpop.f32.mrb[9].mxu0  ;;  %v374_v49 = vpop.f32.mrb[9].mxu1 }
 0x102   :  { %v262_v50 = vadd.f32 %v261_v48, %v3043_v42  ;;  %v375_v51 = vadd.f32 %v374_v49, %v3046_v43  ;;  %v263_v52 = vpop.f32.mrb[10].mxu0  ;;  %v376_v53 = vpop.f32.mrb[10].mxu1 }
 0x103   :  { %v264_v54 = vadd.f32 %v263_v52, %v3037_v40  ;;  %v377_v55 = vadd.f32 %v376_v53, %v3040_v41  ;;  %v265_v56 = vpop.f32.mrb[11].mxu0  ;;  %v378_v57 = vpop.f32.mrb[11].mxu1  ;;  %v447_v60 = vmax.f32 %v260_v46, 0.0  ;;  %v449_v61 = vmax.f32 %v373_v47, 0.0 }
 0x104   :  { %v266_v58 = vadd.f32 %v265_v56, %v3043_v42  ;;  %v379_v59 = vadd.f32 %v378_v57, %v3046_v43  ;;  %v448_v0 = vmax.f32 %v262_v50, 0.0  ;;  %v450_v1 = vmax.f32 %v375_v51, 0.0 }
 0x105   :  { %v451_v62 = vmax.f32 %v264_v54, 0.0  ;;  %v453_v63 = vmax.f32 %v377_v55, 0.0 }
 0x106   :  { %v452_v2 = vmax.f32 %v266_v58, 0.0  ;;  %v454_v3 = vmax.f32 %v379_v59, 0.0 }
 0x107   :  { %v3088_v8 = vpack.c.bf16 %v451_v62, %v447_v60  ;;  %v3090_v9 = vpack.c.bf16 %v453_v63, %v449_v61 }
 0x108   :  { %v3092_v10 = vpack.c.bf16 %v452_v2, %v448_v0  ;;  %v3094_v11 = vpack.c.bf16 %v454_v3, %v450_v1  ;;  %v269_v12 = vpop.f32.mrb[12].mxu0  ;;  %v382_v13 = vpop.f32.mrb[12].mxu1 }
 0x109   :  { %v270_v14 = vadd.f32 %v269_v12, %v3037_v40  ;;  %v383_v15 = vadd.f32 %v382_v13, %v3040_v41  ;;  %v271_v16 = vpop.f32.mrb[13].mxu0  ;;  %v384_v17 = vpop.f32.mrb[13].mxu1 }
 0x10a   :  { %v272_v18 = vadd.f32 %v271_v16, %v3043_v42  ;;  %v385_v19 = vadd.f32 %v384_v17, %v3046_v43  ;;  %v273_v20 = vpop.f32.mrb[14].mxu0  ;;  %v386_v21 = vpop.f32.mrb[14].mxu1 }
 0x10b   :  { %v274_v22 = vadd.f32 %v273_v20, %v3037_v40  ;;  %v387_v23 = vadd.f32 %v386_v21, %v3040_v41  ;;  %v275_v24 = vpop.f32.mrb[15].mxu0  ;;  %v388_v25 = vpop.f32.mrb[15].mxu1  ;;  %v455_v28 = vmax.f32 %v270_v14, 0.0  ;;  %v457_v29 = vmax.f32 %v383_v15, 0.0 }
 0x10c   :  { %v276_v26 = vadd.f32 %v275_v24, %v3043_v42  ;;  %v389_v27 = vadd.f32 %v388_v25, %v3046_v43  ;;  %v456_v44 = vmax.f32 %v272_v18, 0.0  ;;  %v458_v45 = vmax.f32 %v385_v19, 0.0 }
 0x10d   :  { %v459_v30 = vmax.f32 %v274_v22, 0.0  ;;  %v461_v31 = vmax.f32 %v387_v23, 0.0 }
 0x10e   :  { %v460_v46 = vmax.f32 %v276_v26, 0.0  ;;  %v462_v47 = vmax.f32 %v389_v27, 0.0 }
 0x10f   :  { %v3104_v48 = vpack.c.bf16 %v459_v30, %v455_v28  ;;  %v3106_v49 = vpack.c.bf16 %v461_v31, %v457_v29 }
 0x110   :  { %v3108_v50 = vpack.c.bf16 %v460_v46, %v456_v44  ;;  %v3110_v51 = vpack.c.bf16 %v462_v47, %v458_v45  ;;  %v279_v52 = vpop.f32.mrb[16].mxu0  ;;  %v392_v53 = vpop.f32.mrb[16].mxu1 }
 0x111   :  { %v280_v54 = vadd.f32 %v279_v52, %v3037_v40  ;;  %v393_v55 = vadd.f32 %v392_v53, %v3040_v41  ;;  %v281_v56 = vpop.f32.mrb[17].mxu0  ;;  %v394_v57 = vpop.f32.mrb[17].mxu1 }
 0x112   :  { %v282_v58 = vadd.f32 %v281_v56, %v3043_v42  ;;  %v395_v59 = vadd.f32 %v394_v57, %v3046_v43  ;;  %v283_v60 = vpop.f32.mrb[18].mxu0  ;;  %v396_v61 = vpop.f32.mrb[18].mxu1 }
 0x113   :  { %v284_v62 = vadd.f32 %v283_v60, %v3037_v40  ;;  %v397_v63 = vadd.f32 %v396_v61, %v3040_v41  ;;  %v285_v0 = vpop.f32.mrb[19].mxu0  ;;  %v398_v1 = vpop.f32.mrb[19].mxu1  ;;  %v463_v12 = vmax.f32 %v280_v54, 0.0  ;;  %v465_v13 = vmax.f32 %v393_v55, 0.0 }
 0x114   :  { %v286_v2 = vadd.f32 %v285_v0, %v3043_v42  ;;  %v399_v3 = vadd.f32 %v398_v1, %v3046_v43  ;;  %v464_v16 = vmax.f32 %v282_v58, 0.0  ;;  %v466_v17 = vmax.f32 %v395_v59, 0.0 }
 0x115   :  { %v467_v14 = vmax.f32 %v284_v62, 0.0  ;;  %v469_v15 = vmax.f32 %v397_v63, 0.0 }
 0x116   :  { %v468_v18 = vmax.f32 %v286_v2, 0.0  ;;  %v470_v19 = vmax.f32 %v399_v3, 0.0 }
 0x117   :  { %v3120_v20 = vpack.c.bf16 %v467_v14, %v463_v12  ;;  %v3122_v21 = vpack.c.bf16 %v469_v15, %v465_v13 }
 0x118   :  { %v3124_v22 = vpack.c.bf16 %v468_v18, %v464_v16  ;;  %v3126_v23 = vpack.c.bf16 %v470_v19, %v466_v17  ;;  %v289_v24 = vpop.f32.mrb[20].mxu0  ;;  %v402_v25 = vpop.f32.mrb[20].mxu1 }
 0x119   :  { %v290_v26 = vadd.f32 %v289_v24, %v3037_v40  ;;  %v403_v27 = vadd.f32 %v402_v25, %v3040_v41  ;;  %v291_v28 = vpop.f32.mrb[21].mxu0  ;;  %v404_v29 = vpop.f32.mrb[21].mxu1 }
 0x11a   :  { %v292_v30 = vadd.f32 %v291_v28, %v3043_v42  ;;  %v405_v31 = vadd.f32 %v404_v29, %v3046_v43  ;;  %v293_v44 = vpop.f32.mrb[22].mxu0  ;;  %v406_v45 = vpop.f32.mrb[22].mxu1 }
 0x11b   :  { %v294_v46 = vadd.f32 %v293_v44, %v3037_v40  ;;  %v407_v47 = vadd.f32 %v406_v45, %v3040_v41  ;;  %v295_v52 = vpop.f32.mrb[23].mxu0  ;;  %v408_v53 = vpop.f32.mrb[23].mxu1  ;;  %v471_v56 = vmax.f32 %v290_v26, 0.0  ;;  %v473_v57 = vmax.f32 %v403_v27, 0.0 }
 0x11c   :  { %v296_v54 = vadd.f32 %v295_v52, %v3043_v42  ;;  %v409_v55 = vadd.f32 %v408_v53, %v3046_v43  ;;  %v472_v60 = vmax.f32 %v292_v30, 0.0  ;;  %v474_v61 = vmax.f32 %v405_v31, 0.0 }
 0x11d   :  { %v475_v58 = vmax.f32 %v294_v46, 0.0  ;;  %v477_v59 = vmax.f32 %v407_v47, 0.0 }
 0x11e   :  { %v476_v62 = vmax.f32 %v296_v54, 0.0  ;;  %v478_v63 = vmax.f32 %v409_v55, 0.0 }
 0x11f   :  { %v3136_v0 = vpack.c.bf16 %v475_v58, %v471_v56  ;;  %v3138_v1 = vpack.c.bf16 %v477_v59, %v473_v57 }
 0x120   :  { %v3140_v2 = vpack.c.bf16 %v476_v62, %v472_v60  ;;  %v3142_v3 = vpack.c.bf16 %v478_v63, %v474_v61  ;;  %v299_v12 = vpop.f32.mrb[24].mxu0  ;;  %v412_v13 = vpop.f32.mrb[24].mxu1 }
 0x121   :  { %v300_v14 = vadd.f32 %v299_v12, %v3037_v40  ;;  %v413_v15 = vadd.f32 %v412_v13, %v3040_v41  ;;  %v301_v16 = vpop.f32.mrb[25].mxu0  ;;  %v414_v17 = vpop.f32.mrb[25].mxu1 }
 0x122   :  { %v302_v18 = vadd.f32 %v301_v16, %v3043_v42  ;;  %v415_v19 = vadd.f32 %v414_v17, %v3046_v43  ;;  %v303_v24 = vpop.f32.mrb[26].mxu0  ;;  %v416_v25 = vpop.f32.mrb[26].mxu1 }
 0x123   :  { %v304_v26 = vadd.f32 %v303_v24, %v3037_v40  ;;  %v417_v27 = vadd.f32 %v416_v25, %v3040_v41  ;;  %v305_v28 = vpop.f32.mrb[27].mxu0  ;;  %v418_v29 = vpop.f32.mrb[27].mxu1  ;;  %v479_v44 = vmax.f32 %v300_v14, 0.0  ;;  %v481_v45 = vmax.f32 %v413_v15, 0.0 }
 0x124   :  { %v306_v30 = vadd.f32 %v305_v28, %v3043_v42  ;;  %v419_v31 = vadd.f32 %v418_v29, %v3046_v43  ;;  %v480_v52 = vmax.f32 %v302_v18, 0.0  ;;  %v482_v53 = vmax.f32 %v415_v19, 0.0 }
 0x125   :  { %v483_v46 = vmax.f32 %v304_v26, 0.0  ;;  %v485_v47 = vmax.f32 %v417_v27, 0.0 }
 0x126   :  { %v484_v54 = vmax.f32 %v306_v30, 0.0  ;;  %v486_v55 = vmax.f32 %v419_v31, 0.0 }
 0x127   :  { %v3152_v56 = vpack.c.bf16 %v483_v46, %v479_v44  ;;  %v3154_v57 = vpack.c.bf16 %v485_v47, %v481_v45 }
 0x128   :  { %v3156_v58 = vpack.c.bf16 %v484_v54, %v480_v52  ;;  %v3158_v59 = vpack.c.bf16 %v486_v55, %v482_v53  ;;  %v309_v60 = vpop.f32.mrb[28].mxu0  ;;  %v422_v61 = vpop.f32.mrb[28].mxu1 }
 0x129   :  { %v310_v62 = vadd.f32 %v309_v60, %v3037_v40  ;;  %v423_v63 = vadd.f32 %v422_v61, %v3040_v41  ;;  %v311_v12 = vpop.f32.mrb[29].mxu0  ;;  %v424_v13 = vpop.f32.mrb[29].mxu1 }
 0x12a   :  { %v312_v14 = vadd.f32 %v311_v12, %v3043_v42  ;;  %v425_v15 = vadd.f32 %v424_v13, %v3046_v43  ;;  %v313_v16 = vpop.f32.mrb[30].mxu0  ;;  %v426_v17 = vpop.f32.mrb[30].mxu1 }
 0x12b   :  { %v314_v18 = vadd.f32 %v313_v16, %v3037_v40  ;;  %v427_v19 = vadd.f32 %v426_v17, %v3040_v41  ;;  %v315_v24 = vpop.f32.mrb[31].mxu0  ;;  %v428_v25 = vpop.f32.mrb[31].mxu1  ;;  %v487_v28 = vmax.f32 %v310_v62, 0.0  ;;  %v489_v29 = vmax.f32 %v423_v63, 0.0 }
 0x12c   :  { %v316_v26 = vadd.f32 %v315_v24, %v3043_v42  ;;  %v429_v27 = vadd.f32 %v428_v25, %v3046_v43  ;;  %v488_v44 = vmax.f32 %v312_v14, 0.0  ;;  %v490_v45 = vmax.f32 %v425_v15, 0.0 }
 0x12d   :  { %v491_v30 = vmax.f32 %v314_v18, 0.0  ;;  %v493_v31 = vmax.f32 %v427_v19, 0.0 }
 0x12e   :  { %v492_v46 = vmax.f32 %v316_v26, 0.0  ;;  %v494_v47 = vmax.f32 %v429_v27, 0.0 }
 0x12f   :  { %v3168_v52 = vpack.c.bf16 %v491_v30, %v487_v28  ;;  %v3170_v53 = vpack.c.bf16 %v493_v31, %v489_v29 }
 0x130   :  { %v3172_v40 = vpack.c.bf16 %v492_v46, %v488_v44  ;;  %v3174_v41 = vpack.c.bf16 %v494_v47, %v490_v45 }
 0x131   :  { %2851 = dma.done.wait [#allocation6], 16384 }
 0x132   :  { %2852 = vsyncadd [#allocation6], 4294950912  ;;  %777 = vmatprep.mubr.bf16.mxu0 %v3060_v6  ;;  %1003 = vmatprep.mubr.bf16.mxu1 %v3060_v6  ;;  %v596_v42 = vld [vmem:[#allocation3 + $0x8] sm:$0xff]  ;;  %v598_v43 = vld [vmem:[#allocation3 + $0x18] sm:$0xff] }
 0x133   :  { %v595_v54 = vld [vmem:[#allocation3] sm:$0xff]  ;;  %745 = vmatprep.subr.bf16.mxu0 %v596_v42  ;;  %971 = vmatprep.subr.bf16.mxu1 %v598_v43  ;;  %v597_v55 = vld [vmem:[#allocation3 + $0x10] sm:$0xff]  ;;  %v600_v60 = vld [vmem:[#allocation3 + $0x28] sm:$0xff] }
 0x134   :  { %v602_v61 = vld [vmem:[#allocation3 + $0x38] sm:$0xff]  ;;  %746 = vmatpush1.bf16.msra.mxu0 %v595_v54  ;;  %972 = vmatpush1.bf16.msra.mxu1 %v597_v55  ;;  %v599_v62 = vld [vmem:[#allocation3 + $0x20] sm:$0xff]  ;;  %v601_v63 = vld [vmem:[#allocation3 + $0x30] sm:$0xff] }
 0x135   :  { %747 = vmatprep.subr.bf16.mxu0 %v600_v60  ;;  %973 = vmatprep.subr.bf16.mxu1 %v602_v61  ;;  %v604_v12 = vld [vmem:[#allocation3 + $0x48] sm:$0xff]  ;;  %v606_v13 = vld [vmem:[#allocation3 + $0x58] sm:$0xff]  ;;  %v603_v6 = vld [vmem:[#allocation3 + $0x40] sm:$0xff] }
 0x136   :  { %v605_v14 = vld [vmem:[#allocation3 + $0x50] sm:$0xff]  ;;  %v608_v15 = vld [vmem:[#allocation3 + $0x68] sm:$0xff]  ;;  %v610_v16 = vld [vmem:[#allocation3 + $0x78] sm:$0xff] }
 0x137   :  { %v607_v17 = vld [vmem:[#allocation3 + $0x60] sm:$0xff]  ;;  %v609_v18 = vld [vmem:[#allocation3 + $0x70] sm:$0xff]  ;;  %v612_v19 = vld [vmem:[#allocation3 + $0x88] sm:$0xff] }
 0x138   :  { %748 = vmatpush1.bf16.msra.mxu0 %v599_v62  ;;  %974 = vmatpush1.bf16.msra.mxu1 %v601_v63  ;;  %v614_v24 = vld [vmem:[#allocation3 + $0x98] sm:$0xff]  ;;  %v611_v25 = vld [vmem:[#allocation3 + $0x80] sm:$0xff]  ;;  %v613_v26 = vld [vmem:[#allocation3 + $0x90] sm:$0xff] }
 0x139   :  { %749 = vmatprep.subr.bf16.mxu0 %v604_v12  ;;  %975 = vmatprep.subr.bf16.mxu1 %v606_v13  ;;  %v616_v27 = vld [vmem:[#allocation3 + $0xa8] sm:$0xff]  ;;  %v618_v28 = vld [vmem:[#allocation3 + $0xb8] sm:$0xff]  ;;  %v615_v29 = vld [vmem:[#allocation3 + $0xa0] sm:$0xff] }
 0x13a   :  { %v617_v30 = vld [vmem:[#allocation3 + $0xb0] sm:$0xff]  ;;  %v620_v31 = vld [vmem:[#allocation3 + $0xc8] sm:$0xff]  ;;  %v622_v44 = vld [vmem:[#allocation3 + $0xd8] sm:$0xff] }
 0x13b   :  { %v619_v45 = vld [vmem:[#allocation3 + $0xc0] sm:$0xff]  ;;  %v621_v46 = vld [vmem:[#allocation3 + $0xd0] sm:$0xff]  ;;  %v624_v47 = vld [vmem:[#allocation3 + $0xe8] sm:$0xff] }
 0x13c   :  { %750 = vmatpush1.bf16.msra.mxu0 %v603_v6  ;;  %976 = vmatpush1.bf16.msra.mxu1 %v605_v14  ;;  %v626_v42 = vld [vmem:[#allocation3 + $0xf8] sm:$0xff]  ;;  %v623_v43 = vld [vmem:[#allocation3 + $0xe0] sm:$0xff]  ;;  %v625_v54 = vld [vmem:[#allocation3 + $0xf0] sm:$0xff] }
 0x13d   :  { %751 = vmatprep.subr.bf16.mxu0 %v608_v15  ;;  %977 = vmatprep.subr.bf16.mxu1 %v610_v16  ;;  %v628_v55 = vld [vmem:[#allocation3 + $0x108] sm:$0xff]  ;;  %v630_v60 = vld [vmem:[#allocation3 + $0x118] sm:$0xff]  ;;  %v627_v61 = vld [vmem:[#allocation3 + $0x100] sm:$0xff] }
 0x13e   :  { %v629_v62 = vld [vmem:[#allocation3 + $0x110] sm:$0xff]  ;;  %v632_v63 = vld [vmem:[#allocation3 + $0x128] sm:$0xff]  ;;  %v634_v12 = vld [vmem:[#allocation3 + $0x138] sm:$0xff] }
 0x13f   :  { %v631_v13 = vld [vmem:[#allocation3 + $0x120] sm:$0xff]  ;;  %v633_v6 = vld [vmem:[#allocation3 + $0x130] sm:$0xff]  ;;  %v636_v14 = vld [vmem:[#allocation3 + $0x148] sm:$0xff] }
 0x140   :  { %752 = vmatpush1.bf16.msra.mxu0 %v607_v17  ;;  %978 = vmatpush1.bf16.msra.mxu1 %v609_v18  ;;  %v638_v15 = vld [vmem:[#allocation3 + $0x158] sm:$0xff]  ;;  %v635_v16 = vld [vmem:[#allocation3 + $0x140] sm:$0xff]  ;;  %v637_v17 = vld [vmem:[#allocation3 + $0x150] sm:$0xff] }
 0x141   :  { %753 = vmatprep.subr.bf16.mxu0 %v612_v19  ;;  %979 = vmatprep.subr.bf16.mxu1 %v614_v24  ;;  %v640_v18 = vld [vmem:[#allocation3 + $0x168] sm:$0xff]  ;;  %v642_v19 = vld [vmem:[#allocation3 + $0x178] sm:$0xff]  ;;  %v639_v24 = vld [vmem:[#allocation3 + $0x160] sm:$0xff] }
 0x144   :  { %754 = vmatpush1.bf16.msra.mxu0 %v611_v25  ;;  %980 = vmatpush1.bf16.msra.mxu1 %v613_v26  ;;  %v641_v25 = vld [vmem:[#allocation3 + $0x170] sm:$0xff]  ;;  %v644_v26 = vld [vmem:[#allocation3 + $0x188] sm:$0xff] }
 0x145   :  { %755 = vmatprep.subr.bf16.mxu0 %v616_v27  ;;  %981 = vmatprep.subr.bf16.mxu1 %v618_v28  ;;  %v646_v27 = vld [vmem:[#allocation3 + $0x198] sm:$0xff]  ;;  %v643_v28 = vld [vmem:[#allocation3 + $0x180] sm:$0xff] }
 0x148   :  { %756 = vmatpush1.bf16.msra.mxu0 %v615_v29  ;;  %982 = vmatpush1.bf16.msra.mxu1 %v617_v30  ;;  %v645_v29 = vld [vmem:[#allocation3 + $0x190] sm:$0xff]  ;;  %v648_v30 = vld [vmem:[#allocation3 + $0x1a8] sm:$0xff] }
 0x149   :  { %757 = vmatprep.subr.bf16.mxu0 %v620_v31  ;;  %983 = vmatprep.subr.bf16.mxu1 %v622_v44  ;;  %v650_v31 = vld [vmem:[#allocation3 + $0x1b8] sm:$0xff]  ;;  %v647_v44 = vld [vmem:[#allocation3 + $0x1a0] sm:$0xff] }
 0x14c   :  { %758 = vmatpush1.bf16.msra.mxu0 %v619_v45  ;;  %984 = vmatpush1.bf16.msra.mxu1 %v621_v46  ;;  %v649_v45 = vld [vmem:[#allocation3 + $0x1b0] sm:$0xff]  ;;  %v652_v46 = vld [vmem:[#allocation3 + $0x1c8] sm:$0xff] }
 0x14d   :  { %759 = vmatprep.subr.bf16.mxu0 %v624_v47  ;;  %985 = vmatprep.subr.bf16.mxu1 %v626_v42  ;;  %v654_v47 = vld [vmem:[#allocation3 + $0x1d8] sm:$0xff]  ;;  %v651_v42 = vld [vmem:[#allocation3 + $0x1c0] sm:$0xff] }
 0x150   :  { %760 = vmatpush1.bf16.msra.mxu0 %v623_v43  ;;  %986 = vmatpush1.bf16.msra.mxu1 %v625_v54  ;;  %v653_v43 = vld [vmem:[#allocation3 + $0x1d0] sm:$0xff]  ;;  %v656_v54 = vld [vmem:[#allocation3 + $0x1e8] sm:$0xff] }
 0x151   :  { %761 = vmatprep.subr.bf16.mxu0 %v628_v55  ;;  %987 = vmatprep.subr.bf16.mxu1 %v630_v60  ;;  %v658_v55 = vld [vmem:[#allocation3 + $0x1f8] sm:$0xff]  ;;  %v655_v60 = vld [vmem:[#allocation3 + $0x1e0] sm:$0xff] }
 0x154   :  { %762 = vmatpush1.bf16.msra.mxu0 %v627_v61  ;;  %988 = vmatpush1.bf16.msra.mxu1 %v629_v62  ;;  %v657_v61 = vld [vmem:[#allocation3 + $0x1f0] sm:$0xff]  ;;  %v660_v62 = vld [vmem:[#allocation3 + $0x208] sm:$0xff] }
 0x155   :  { %763 = vmatprep.subr.bf16.mxu0 %v632_v63  ;;  %989 = vmatprep.subr.bf16.mxu1 %v634_v12  ;;  %v662_v63 = vld [vmem:[#allocation3 + $0x218] sm:$0xff]  ;;  %v659_v12 = vld [vmem:[#allocation3 + $0x200] sm:$0xff] }
 0x158   :  { %764 = vmatpush1.bf16.msra.mxu0 %v631_v13  ;;  %990 = vmatpush1.bf16.msra.mxu1 %v633_v6  ;;  %v661_v13 = vld [vmem:[#allocation3 + $0x210] sm:$0xff]  ;;  %v664_v6 = vld [vmem:[#allocation3 + $0x228] sm:$0xff] }
 0x159   :  { %765 = vmatprep.subr.bf16.mxu0 %v636_v14  ;;  %991 = vmatprep.subr.bf16.mxu1 %v638_v15  ;;  %v666_v14 = vld [vmem:[#allocation3 + $0x238] sm:$0xff]  ;;  %v663_v15 = vld [vmem:[#allocation3 + $0x220] sm:$0xff] }
 0x15c   :  { %766 = vmatpush1.bf16.msra.mxu0 %v635_v16  ;;  %992 = vmatpush1.bf16.msra.mxu1 %v637_v17  ;;  %v665_v16 = vld [vmem:[#allocation3 + $0x230] sm:$0xff]  ;;  %v668_v17 = vld [vmem:[#allocation3 + $0x248] sm:$0xff] }
 0x15d   :  { %767 = vmatprep.subr.bf16.mxu0 %v640_v18  ;;  %993 = vmatprep.subr.bf16.mxu1 %v642_v19  ;;  %v670_v18 = vld [vmem:[#allocation3 + $0x258] sm:$0xff]  ;;  %v667_v19 = vld [vmem:[#allocation3 + $0x240] sm:$0xff] }
 0x160   :  { %768 = vmatpush1.bf16.msra.mxu0 %v639_v24  ;;  %994 = vmatpush1.bf16.msra.mxu1 %v641_v25  ;;  %v669_v24 = vld [vmem:[#allocation3 + $0x250] sm:$0xff]  ;;  %v672_v25 = vld [vmem:[#allocation3 + $0x268] sm:$0xff] }
 0x161   :  { %769 = vmatprep.subr.bf16.mxu0 %v644_v26  ;;  %995 = vmatprep.subr.bf16.mxu1 %v646_v27  ;;  %v671_v26 = vld [vmem:[#allocation3 + $0x260] sm:$0xff]  ;;  %v676_v27 = vld [vmem:[#allocation3 + $0x288] sm:$0xff] }
 0x164   :  { %770 = vmatpush1.bf16.msra.mxu0 %v643_v28  ;;  %996 = vmatpush1.bf16.msra.mxu1 %v645_v29  ;;  %v678_v28 = vld [vmem:[#allocation3 + $0x298] sm:$0xff]  ;;  %v675_v29 = vld [vmem:[#allocation3 + $0x280] sm:$0xff] }
 0x165   :  { %771 = vmatprep.subr.bf16.mxu0 %v648_v30  ;;  %997 = vmatprep.subr.bf16.mxu1 %v650_v31  ;;  %v677_v30 = vld [vmem:[#allocation3 + $0x290] sm:$0xff]  ;;  %v680_v31 = vld [vmem:[#allocation3 + $0x2a8] sm:$0xff] }
 0x168   :  { %772 = vmatpush1.bf16.msra.mxu0 %v647_v44  ;;  %998 = vmatpush1.bf16.msra.mxu1 %v649_v45  ;;  %v679_v44 = vld [vmem:[#allocation3 + $0x2a0] sm:$0xff]  ;;  %v684_v45 = vld [vmem:[#allocation3 + $0x2c8] sm:$0xff] }
 0x169   :  { %773 = vmatprep.subr.bf16.mxu0 %v652_v46  ;;  %999 = vmatprep.subr.bf16.mxu1 %v654_v47  ;;  %v686_v46 = vld [vmem:[#allocation3 + $0x2d8] sm:$0xff]  ;;  %v683_v47 = vld [vmem:[#allocation3 + $0x2c0] sm:$0xff] }
 0x16c   :  { %774 = vmatpush1.bf16.msra.mxu0 %v651_v42  ;;  %1000 = vmatpush1.bf16.msra.mxu1 %v653_v43  ;;  %v685_v42 = vld [vmem:[#allocation3 + $0x2d0] sm:$0xff]  ;;  %v688_v43 = vld [vmem:[#allocation3 + $0x2e8] sm:$0xff] }
 0x16d   :  { %775 = vmatprep.subr.bf16.mxu0 %v656_v54  ;;  %1001 = vmatprep.subr.bf16.mxu1 %v658_v55  ;;  %v687_v54 = vld [vmem:[#allocation3 + $0x2e0] sm:$0xff]  ;;  %v692_v55 = vld [vmem:[#allocation3 + $0x308] sm:$0xff] }
 0x170   :  { %776 = vmatpush1.bf16.msra.mxu0 %v655_v60  ;;  %1002 = vmatpush1.bf16.msra.mxu1 %v657_v61  ;;  %v694_v60 = vld [vmem:[#allocation3 + $0x318] sm:$0xff]  ;;  %v691_v61 = vld [vmem:[#allocation3 + $0x300] sm:$0xff] }
 0x171   :  { %858 = vmatprep.subr.bf16.mxu0 %v660_v62  ;;  %1084 = vmatprep.subr.bf16.mxu1 %v662_v63  ;;  %v693_v62 = vld [vmem:[#allocation3 + $0x310] sm:$0xff]  ;;  %v696_v63 = vld [vmem:[#allocation3 + $0x328] sm:$0xff] }
 0x173   :  { %778 = vmatmul.mubr.bf16.vlgmr.msra.gmra.mrb[32].mxu0 %v3056_v4  ;;  %1004 = vmatmul.mubr.bf16.vlgmr.msra.gmra.mrb[32].mxu1 %v3056_v4  ;;  %v674_v4 = vld [vmem:[#allocation3 + $0x278] sm:$0xff] }
 0x174   :  { %859 = vmatpush1.bf16.msra.mxu0 %v659_v12  ;;  %1085 = vmatpush1.bf16.msra.mxu1 %v661_v13  ;;  %v695_v12 = vld [vmem:[#allocation3 + $0x320] sm:$0xff]  ;;  %v700_v13 = vld [vmem:[#allocation3 + $0x348] sm:$0xff] }
 0x175   :  { %860 = vmatprep.subr.bf16.mxu0 %v664_v6  ;;  %1086 = vmatprep.subr.bf16.mxu1 %v666_v14  ;;  %v702_v6 = vld [vmem:[#allocation3 + $0x358] sm:$0xff]  ;;  %v699_v14 = vld [vmem:[#allocation3 + $0x340] sm:$0xff] }
 0x176   :  { %787 = vmatprep.mubr.bf16.mxu0 %v3076_v34  ;;  %1013 = vmatprep.mubr.bf16.mxu1 %v3076_v34  ;;  %v673_v34 = vld [vmem:[#allocation3 + $0x270] sm:$0xff] }
 0x178   :  { %861 = vmatpush1.bf16.msra.mxu0 %v663_v15  ;;  %1087 = vmatpush1.bf16.msra.mxu1 %v665_v16  ;;  %v701_v15 = vld [vmem:[#allocation3 + $0x350] sm:$0xff]  ;;  %v704_v16 = vld [vmem:[#allocation3 + $0x368] sm:$0xff] }
 0x179   :  { %862 = vmatprep.subr.bf16.mxu0 %v668_v17  ;;  %1088 = vmatprep.subr.bf16.mxu1 %v670_v18  ;;  %v703_v17 = vld [vmem:[#allocation3 + $0x360] sm:$0xff]  ;;  %v708_v18 = vld [vmem:[#allocation3 + $0x388] sm:$0xff] }
 0x17b   :  { %788 = vmatmul.mubr.bf16.gmra.mrb[36].mxu0 %v3072_v32  ;;  %1014 = vmatmul.mubr.bf16.gmra.mrb[36].mxu1 %v3072_v32  ;;  %v682_v32 = vld [vmem:[#allocation3 + $0x2b8] sm:$0xff] }
 0x17c   :  { %863 = vmatpush1.bf16.msra.mxu0 %v667_v19  ;;  %1089 = vmatpush1.bf16.msra.mxu1 %v669_v24  ;;  %v710_v19 = vld [vmem:[#allocation3 + $0x398] sm:$0xff]  ;;  %v707_v24 = vld [vmem:[#allocation3 + $0x380] sm:$0xff] }
 0x17d   :  { %864 = vmatprep.subr.bf16.mxu0 %v672_v25  ;;  %1090 = vmatprep.subr.bf16.mxu1 %v674_v4  ;;  %v709_v25 = vld [vmem:[#allocation3 + $0x390] sm:$0xff]  ;;  %v712_v4 = vld [vmem:[#allocation3 + $0x3a8] sm:$0xff] }
 0x17e   :  { %797 = vmatprep.mubr.bf16.mxu0 %v3092_v10  ;;  %1023 = vmatprep.mubr.bf16.mxu1 %v3092_v10  ;;  %v681_v10 = vld [vmem:[#allocation3 + $0x2b0] sm:$0xff] }
 0x180   :  { %865 = vmatpush1.bf16.msra.mxu0 %v671_v26  ;;  %1091 = vmatpush1.bf16.msra.mxu1 %v673_v34  ;;  %v711_v26 = vld [vmem:[#allocation3 + $0x3a0] sm:$0xff]  ;;  %v716_v34 = vld [vmem:[#allocation3 + $0x3c8] sm:$0xff] }
 0x181   :  { %866 = vmatprep.subr.bf16.mxu0 %v676_v27  ;;  %1092 = vmatprep.subr.bf16.mxu1 %v678_v28  ;;  %v718_v27 = vld [vmem:[#allocation3 + $0x3d8] sm:$0xff]  ;;  %v715_v28 = vld [vmem:[#allocation3 + $0x3c0] sm:$0xff] }
 0x183   :  { %798 = vmatmul.mubr.bf16.gmra.mrb[40].mxu0 %v3088_v8  ;;  %1024 = vmatmul.mubr.bf16.gmra.mrb[40].mxu1 %v3088_v8  ;;  %v690_v8 = vld [vmem:[#allocation3 + $0x2f8] sm:$0xff] }
 0x184   :  { %867 = vmatpush1.bf16.msra.mxu0 %v675_v29  ;;  %1093 = vmatpush1.bf16.msra.mxu1 %v677_v30  ;;  %v717_v29 = vld [vmem:[#allocation3 + $0x3d0] sm:$0xff]  ;;  %v720_v30 = vld [vmem:[#allocation3 + $0x3e8] sm:$0xff] }
 0x185   :  { %868 = vmatprep.subr.bf16.mxu0 %v680_v31  ;;  %1094 = vmatprep.subr.bf16.mxu1 %v682_v32  ;;  %v719_v31 = vld [vmem:[#allocation3 + $0x3e0] sm:$0xff] }
 0x186   :  { %807 = vmatprep.mubr.bf16.mxu0 %v3108_v50  ;;  %1033 = vmatprep.mubr.bf16.mxu1 %v3108_v50  ;;  %v689_v50 = vld [vmem:[#allocation3 + $0x2f0] sm:$0xff] }
 0x188   :  { %869 = vmatpush1.bf16.msra.mxu0 %v679_v44  ;;  %1095 = vmatpush1.bf16.msra.mxu1 %v681_v10 }
 0x189   :  { %870 = vmatprep.subr.bf16.mxu0 %v684_v45  ;;  %1096 = vmatprep.subr.bf16.mxu1 %v686_v46 }
 0x18b   :  { %808 = vmatmul.mubr.bf16.gmra.mrb[44].mxu0 %v3104_v48  ;;  %1034 = vmatmul.mubr.bf16.gmra.mrb[44].mxu1 %v3104_v48  ;;  %v698_v48 = vld [vmem:[#allocation3 + $0x338] sm:$0xff] }
 0x18c   :  { %871 = vmatpush1.bf16.msra.mxu0 %v683_v47  ;;  %1097 = vmatpush1.bf16.msra.mxu1 %v685_v42 }
 0x18d   :  { %872 = vmatprep.subr.bf16.mxu0 %v688_v43  ;;  %1098 = vmatprep.subr.bf16.mxu1 %v690_v8 }
 0x18e   :  { %817 = vmatprep.mubr.bf16.mxu0 %v3124_v22  ;;  %1043 = vmatprep.mubr.bf16.mxu1 %v3124_v22  ;;  %v697_v22 = vld [vmem:[#allocation3 + $0x330] sm:$0xff] }
 0x190   :  { %873 = vmatpush1.bf16.msra.mxu0 %v687_v54  ;;  %1099 = vmatpush1.bf16.msra.mxu1 %v689_v50 }
 0x191   :  { %874 = vmatprep.subr.bf16.mxu0 %v692_v55  ;;  %1100 = vmatprep.subr.bf16.mxu1 %v694_v60 }
 0x193   :  { %818 = vmatmul.mubr.bf16.gmra.mrb[48].mxu0 %v3120_v20  ;;  %1044 = vmatmul.mubr.bf16.gmra.mrb[48].mxu1 %v3120_v20  ;;  %v706_v20 = vld [vmem:[#allocation3 + $0x378] sm:$0xff] }
 0x194   :  { %875 = vmatpush1.bf16.msra.mxu0 %v691_v61  ;;  %1101 = vmatpush1.bf16.msra.mxu1 %v693_v62 }
 0x195   :  { %876 = vmatprep.subr.bf16.mxu0 %v696_v63  ;;  %1102 = vmatprep.subr.bf16.mxu1 %v698_v48 }
 0x196   :  { %827 = vmatprep.mubr.bf16.mxu0 %v3140_v2  ;;  %1053 = vmatprep.mubr.bf16.mxu1 %v3140_v2  ;;  %v705_v2 = vld [vmem:[#allocation3 + $0x370] sm:$0xff] }
 0x198   :  { %877 = vmatpush1.bf16.msra.mxu0 %v695_v12  ;;  %1103 = vmatpush1.bf16.msra.mxu1 %v697_v22 }
 0x199   :  { %878 = vmatprep.subr.bf16.mxu0 %v700_v13  ;;  %1104 = vmatprep.subr.bf16.mxu1 %v702_v6 }
 0x19b   :  { %828 = vmatmul.mubr.bf16.gmra.mrb[52].mxu0 %v3136_v0  ;;  %1054 = vmatmul.mubr.bf16.gmra.mrb[52].mxu1 %v3136_v0  ;;  %v714_v0 = vld [vmem:[#allocation3 + $0x3b8] sm:$0xff] }
 0x19c   :  { %879 = vmatpush1.bf16.msra.mxu0 %v699_v14  ;;  %1105 = vmatpush1.bf16.msra.mxu1 %v701_v15 }
 0x19d   :  { %880 = vmatprep.subr.bf16.mxu0 %v704_v16  ;;  %1106 = vmatprep.subr.bf16.mxu1 %v706_v20 }
 0x19e   :  { %837 = vmatprep.mubr.bf16.mxu0 %v3156_v58  ;;  %1063 = vmatprep.mubr.bf16.mxu1 %v3156_v58  ;;  %v713_v58 = vld [vmem:[#allocation3 + $0x3b0] sm:$0xff] }
 0x1a0   :  { %881 = vmatpush1.bf16.msra.mxu0 %v703_v17  ;;  %1107 = vmatpush1.bf16.msra.mxu1 %v705_v2 }
 0x1a1   :  { %882 = vmatprep.subr.bf16.mxu0 %v708_v18  ;;  %1108 = vmatprep.subr.bf16.mxu1 %v710_v19 }
 0x1a3   :  { %838 = vmatmul.mubr.bf16.gmra.mrb[56].mxu0 %v3152_v56  ;;  %1064 = vmatmul.mubr.bf16.gmra.mrb[56].mxu1 %v3152_v56  ;;  %v722_v56 = vld [vmem:[#allocation3 + $0x3f8] sm:$0xff] }
 0x1a4   :  { %883 = vmatpush1.bf16.msra.mxu0 %v707_v24  ;;  %1109 = vmatpush1.bf16.msra.mxu1 %v709_v25 }
 0x1a5   :  { %884 = vmatprep.subr.bf16.mxu0 %v712_v4  ;;  %1110 = vmatprep.subr.bf16.mxu1 %v714_v0 }
 0x1a6   :  { %847 = vmatprep.mubr.bf16.mxu0 %v3172_v40  ;;  %1073 = vmatprep.mubr.bf16.mxu1 %v3172_v40  ;;  %v721_v40 = vld [vmem:[#allocation3 + $0x3f0] sm:$0xff] }
 0x1a8   :  { %885 = vmatpush1.bf16.msra.mxu0 %v711_v26  ;;  %1111 = vmatpush1.bf16.msra.mxu1 %v713_v58 }
 0x1a9   :  { %886 = vmatprep.subr.bf16.mxu0 %v716_v34  ;;  %1112 = vmatprep.subr.bf16.mxu1 %v718_v27 }
 0x1ab   :  { %848 = vmatmul.mubr.bf16.gmra.mrb[60].mxu0 %v3168_v52  ;;  %1074 = vmatmul.mubr.bf16.gmra.mrb[60].mxu1 %v3168_v52 }
 0x1ac   :  { %887 = vmatpush1.bf16.msra.mxu0 %v715_v28  ;;  %1113 = vmatpush1.bf16.msra.mxu1 %v717_v29 }
 0x1ad   :  { %888 = vmatprep.subr.bf16.mxu0 %v720_v30  ;;  %1114 = vmatprep.subr.bf16.mxu1 %v722_v56 }
 0x1ae   :  { %890 = vmatprep.mubr.bf16.mxu0 %v3062_v7  ;;  %1116 = vmatprep.mubr.bf16.mxu1 %v3062_v7 }
 0x1b0   :  { %889 = vmatpush1.bf16.msra.mxu0 %v719_v31  ;;  %1115 = vmatpush1.bf16.msra.mxu1 %v721_v40 }
 0x1b3   :  { %891 = vmatmul.mubr.bf16.vlgmr.msra.gmra.mrb[32].mxu0 %v3058_v5  ;;  %1117 = vmatmul.mubr.bf16.vlgmr.msra.gmra.mrb[32].mxu1 %v3058_v5  ;;  %v723_v5 = vld [vmem:[%s3694_s3] sm:$0xf] }
 0x1b4   :  { %900 = vmatprep.mubr.bf16.mxu0 %v3078_v37  ;;  %1126 = vmatprep.mubr.bf16.mxu1 %v3078_v37  ;;  %v3244_v7 = vrot.slane %v723_v5, %v3025_v35  ;;  %v3250_v37 = vrot.slane %v723_v5, %v3032_v38 }
 0x1bb   :  { %901 = vmatmul.mubr.bf16.gmra.mrb[36].mxu0 %v3074_v33  ;;  %1127 = vmatmul.mubr.bf16.gmra.mrb[36].mxu1 %v3074_v33  ;;  %v3247_v33 = vrot.slane %v723_v5, %v3027_v36 }
 0x1bc   :  { %910 = vmatprep.mubr.bf16.mxu0 %v3094_v11  ;;  %1136 = vmatprep.mubr.bf16.mxu1 %v3094_v11 }
 0x1c3   :  { %911 = vmatmul.mubr.bf16.gmra.mrb[40].mxu0 %v3090_v9  ;;  %1137 = vmatmul.mubr.bf16.gmra.mrb[40].mxu1 %v3090_v9  ;;  %v3253_v9 = vrot.slane %v723_v5, %v3034_v39 }
 0x1c4   :  { %920 = vmatprep.mubr.bf16.mxu0 %v3110_v51  ;;  %1146 = vmatprep.mubr.bf16.mxu1 %v3110_v51 }
 0x1cb   :  { %921 = vmatmul.mubr.bf16.gmra.mrb[44].mxu0 %v3106_v49  ;;  %1147 = vmatmul.mubr.bf16.gmra.mrb[44].mxu1 %v3106_v49 }
 0x1cc   :  { %930 = vmatprep.mubr.bf16.mxu0 %v3126_v23  ;;  %1156 = vmatprep.mubr.bf16.mxu1 %v3126_v23 }
 0x1d3   :  { %931 = vmatmul.mubr.bf16.gmra.mrb[48].mxu0 %v3122_v21  ;;  %1157 = vmatmul.mubr.bf16.gmra.mrb[48].mxu1 %v3122_v21 }
 0x1d4   :  { %940 = vmatprep.mubr.bf16.mxu0 %v3142_v3  ;;  %1166 = vmatprep.mubr.bf16.mxu1 %v3142_v3 }
 0x1db   :  { %941 = vmatmul.mubr.bf16.gmra.mrb[52].mxu0 %v3138_v1  ;;  %1167 = vmatmul.mubr.bf16.gmra.mrb[52].mxu1 %v3138_v1 }
 0x1dc   :  { %950 = vmatprep.mubr.bf16.mxu0 %v3158_v59  ;;  %1176 = vmatprep.mubr.bf16.mxu1 %v3158_v59 }
 0x1e3   :  { %951 = vmatmul.mubr.bf16.gmra.mrb[56].mxu0 %v3154_v57  ;;  %1177 = vmatmul.mubr.bf16.gmra.mrb[56].mxu1 %v3154_v57 }
 0x1e4   :  { %960 = vmatprep.mubr.bf16.mxu0 %v3174_v41  ;;  %1186 = vmatprep.mubr.bf16.mxu1 %v3174_v41 }
 0x1eb   :  { %961 = vmatmul.mubr.bf16.gmra.mrb[60].mxu0 %v3170_v53  ;;  %1187 = vmatmul.mubr.bf16.gmra.mrb[60].mxu1 %v3170_v53 }
 0x286   :  { %v892_v11 = vpop.f32.mrb[32].mxu0  ;;  %v1118_v49 = vpop.f32.mrb[32].mxu1 }
 0x287   :  { %v2555_v51 = vadd.f32 %v892_v11, %v3244_v7  ;;  %v2587_v21 = vadd.f32 %v1118_v49, %v3247_v33  ;;  %v894_v23 = vpop.f32.mrb[33].mxu0  ;;  %v1120_v1 = vpop.f32.mrb[33].mxu1 }
 0x288   :  { %v2556_v3 = vadd.f32 %v894_v23, %v3250_v37  ;;  %v2588_v57 = vadd.f32 %v1120_v1, %v3253_v9  ;;  %v896_v59 = vpop.f32.mrb[34].mxu0  ;;  %v1122_v52 = vpop.f32.mrb[34].mxu1 }
 0x289   :  { %v2557_v53 = vadd.f32 %v896_v59, %v3244_v7  ;;  %v2589_v41 = vadd.f32 %v1122_v52, %v3247_v33  ;;  %v898_v32 = vpop.f32.mrb[35].mxu0  ;;  %v1124_v44 = vpop.f32.mrb[35].mxu1  ;;  %v1197_v46 = vmax.f32 %v2555_v51, 0.0  ;;  %v1199_v47 = vmax.f32 %v2587_v21, 0.0 }
 0x28a   :  { %v2558_v10 = vadd.f32 %v898_v32, %v3250_v37  ;;  %v2590_v45 = vadd.f32 %v1124_v44, %v3253_v9  ;;  %v1198_v8 = vmax.f32 %v2556_v3, 0.0  ;;  %v1200_v54 = vmax.f32 %v2588_v57, 0.0 }
 0x28b   :  { %v1201_v42 = vmax.f32 %v2557_v53, 0.0  ;;  %v1203_v43 = vmax.f32 %v2589_v41, 0.0 }
 0x28c   :  { %v1202_v50 = vmax.f32 %v2558_v10, 0.0  ;;  %v1204_v55 = vmax.f32 %v2590_v45, 0.0 }
 0x28d   :  { %v3263_v60 = vpack.c.bf16 %v1201_v42, %v1197_v46  ;;  %v3265_v61 = vpack.c.bf16 %v1203_v43, %v1199_v47 }
 0x28e   :  { %v3267_v62 = vpack.c.bf16 %v1202_v50, %v1198_v8  ;;  %v3269_v63 = vpack.c.bf16 %v1204_v55, %v1200_v54  ;;  %v902_v48 = vpop.f32.mrb[36].mxu0  ;;  %v1128_v12 = vpop.f32.mrb[36].mxu1 }
 0x28f   :  { %v2559_v22 = vadd.f32 %v902_v48, %v3244_v7  ;;  %v2591_v13 = vadd.f32 %v1128_v12, %v3247_v33  ;;  %v904_v6 = vpop.f32.mrb[37].mxu0  ;;  %v1130_v14 = vpop.f32.mrb[37].mxu1 }
 0x290   :  { %v2560_v15 = vadd.f32 %v904_v6, %v3250_v37  ;;  %v2592_v16 = vadd.f32 %v1130_v14, %v3253_v9  ;;  %v906_v20 = vpop.f32.mrb[38].mxu0  ;;  %v1132_v17 = vpop.f32.mrb[38].mxu1 }
 0x291   :  { %v2561_v2 = vadd.f32 %v906_v20, %v3244_v7  ;;  %v2593_v18 = vadd.f32 %v1132_v17, %v3247_v33  ;;  %v908_v19 = vpop.f32.mrb[39].mxu0  ;;  %v1134_v24 = vpop.f32.mrb[39].mxu1  ;;  %v1205_v0 = vmax.f32 %v2559_v22, 0.0  ;;  %v1207_v26 = vmax.f32 %v2591_v13, 0.0 }
 0x292   :  { %v2562_v25 = vadd.f32 %v908_v19, %v3250_v37  ;;  %v2594_v4 = vadd.f32 %v1134_v24, %v3253_v9  ;;  %v1206_v27 = vmax.f32 %v2560_v15, 0.0  ;;  %v1208_v28 = vmax.f32 %v2592_v16, 0.0 }
 0x293   :  { %v1209_v58 = vmax.f32 %v2561_v2, 0.0  ;;  %v1211_v34 = vmax.f32 %v2593_v18, 0.0 }
 0x294   :  { %v1210_v29 = vmax.f32 %v2562_v25, 0.0  ;;  %v1212_v30 = vmax.f32 %v2594_v4, 0.0 }
 0x295   :  { %v3279_v56 = vpack.c.bf16 %v1209_v58, %v1205_v0  ;;  %v3281_v31 = vpack.c.bf16 %v1211_v34, %v1207_v26 }
 0x296   :  { %v3283_v40 = vpack.c.bf16 %v1210_v29, %v1206_v27  ;;  %v3285_v5 = vpack.c.bf16 %v1212_v30, %v1208_v28  ;;  %v912_v11 = vpop.f32.mrb[40].mxu0  ;;  %v1138_v49 = vpop.f32.mrb[40].mxu1 }
 0x297   :  { %v2563_v51 = vadd.f32 %v912_v11, %v3244_v7  ;;  %v2595_v21 = vadd.f32 %v1138_v49, %v3247_v33  ;;  %v914_v23 = vpop.f32.mrb[41].mxu0  ;;  %v1140_v1 = vpop.f32.mrb[41].mxu1 }
 0x298   :  { %v2564_v3 = vadd.f32 %v914_v23, %v3250_v37  ;;  %v2596_v57 = vadd.f32 %v1140_v1, %v3253_v9  ;;  %v916_v59 = vpop.f32.mrb[42].mxu0  ;;  %v1142_v52 = vpop.f32.mrb[42].mxu1 }
 0x299   :  { %v2565_v53 = vadd.f32 %v916_v59, %v3244_v7  ;;  %v2597_v41 = vadd.f32 %v1142_v52, %v3247_v33  ;;  %v918_v32 = vpop.f32.mrb[43].mxu0  ;;  %v1144_v44 = vpop.f32.mrb[43].mxu1  ;;  %v1213_v46 = vmax.f32 %v2563_v51, 0.0  ;;  %v1215_v47 = vmax.f32 %v2595_v21, 0.0 }
 0x29a   :  { %v2566_v10 = vadd.f32 %v918_v32, %v3250_v37  ;;  %v2598_v45 = vadd.f32 %v1144_v44, %v3253_v9  ;;  %v1214_v8 = vmax.f32 %v2564_v3, 0.0  ;;  %v1216_v54 = vmax.f32 %v2596_v57, 0.0 }
 0x29b   :  { %v1217_v42 = vmax.f32 %v2565_v53, 0.0  ;;  %v1219_v43 = vmax.f32 %v2597_v41, 0.0 }
 0x29c   :  { %v1218_v50 = vmax.f32 %v2566_v10, 0.0  ;;  %v1220_v55 = vmax.f32 %v2598_v45, 0.0 }
 0x29d   :  { %v3295_v48 = vpack.c.bf16 %v1217_v42, %v1213_v46  ;;  %v3297_v12 = vpack.c.bf16 %v1219_v43, %v1215_v47 }
 0x29e   :  { %v3299_v22 = vpack.c.bf16 %v1218_v50, %v1214_v8  ;;  %v3301_v13 = vpack.c.bf16 %v1220_v55, %v1216_v54  ;;  %v922_v6 = vpop.f32.mrb[44].mxu0  ;;  %v1148_v14 = vpop.f32.mrb[44].mxu1 }
 0x29f   :  { %v2567_v15 = vadd.f32 %v922_v6, %v3244_v7  ;;  %v2599_v16 = vadd.f32 %v1148_v14, %v3247_v33  ;;  %v924_v20 = vpop.f32.mrb[45].mxu0  ;;  %v1150_v17 = vpop.f32.mrb[45].mxu1 }
 0x2a0   :  { %v2568_v2 = vadd.f32 %v924_v20, %v3250_v37  ;;  %v2600_v18 = vadd.f32 %v1150_v17, %v3253_v9  ;;  %v926_v19 = vpop.f32.mrb[46].mxu0  ;;  %v1152_v24 = vpop.f32.mrb[46].mxu1 }
 0x2a1   :  { %v2569_v25 = vadd.f32 %v926_v19, %v3244_v7  ;;  %v2601_v4 = vadd.f32 %v1152_v24, %v3247_v33  ;;  %v928_v0 = vpop.f32.mrb[47].mxu0  ;;  %v1154_v26 = vpop.f32.mrb[47].mxu1  ;;  %v1221_v27 = vmax.f32 %v2567_v15, 0.0  ;;  %v1223_v28 = vmax.f32 %v2599_v16, 0.0 }
 0x2a2   :  { %v2570_v58 = vadd.f32 %v928_v0, %v3250_v37  ;;  %v2602_v34 = vadd.f32 %v1154_v26, %v3253_v9  ;;  %v1222_v11 = vmax.f32 %v2568_v2, 0.0  ;;  %v1224_v49 = vmax.f32 %v2600_v18, 0.0 }
 0x2a3   :  { %v1225_v29 = vmax.f32 %v2569_v25, 0.0  ;;  %v1227_v30 = vmax.f32 %v2601_v4, 0.0 }
 0x2a4   :  { %v1226_v51 = vmax.f32 %v2570_v58, 0.0  ;;  %v1228_v21 = vmax.f32 %v2602_v34, 0.0 }
 0x2a5   :  { %v3311_v23 = vpack.c.bf16 %v1225_v29, %v1221_v27  ;;  %v3313_v1 = vpack.c.bf16 %v1227_v30, %v1223_v28 }
 0x2a6   :  { %v3315_v3 = vpack.c.bf16 %v1226_v51, %v1222_v11  ;;  %v3317_v57 = vpack.c.bf16 %v1228_v21, %v1224_v49  ;;  %v932_v59 = vpop.f32.mrb[48].mxu0  ;;  %v1158_v52 = vpop.f32.mrb[48].mxu1 }
 0x2a7   :  { %v2571_v53 = vadd.f32 %v932_v59, %v3244_v7  ;;  %v2603_v41 = vadd.f32 %v1158_v52, %v3247_v33  ;;  %v934_v32 = vpop.f32.mrb[49].mxu0  ;;  %v1160_v44 = vpop.f32.mrb[49].mxu1 }
 0x2a8   :  { %v2572_v10 = vadd.f32 %v934_v32, %v3250_v37  ;;  %v2604_v45 = vadd.f32 %v1160_v44, %v3253_v9  ;;  %v936_v46 = vpop.f32.mrb[50].mxu0  ;;  %v1162_v47 = vpop.f32.mrb[50].mxu1 }
 0x2a9   :  { %v2573_v42 = vadd.f32 %v936_v46, %v3244_v7  ;;  %v2605_v43 = vadd.f32 %v1162_v47, %v3247_v33  ;;  %v938_v8 = vpop.f32.mrb[51].mxu0  ;;  %v1164_v54 = vpop.f32.mrb[51].mxu1  ;;  %v1229_v6 = vmax.f32 %v2571_v53, 0.0  ;;  %v1231_v14 = vmax.f32 %v2603_v41, 0.0 }
 0x2aa   :  { %v2574_v50 = vadd.f32 %v938_v8, %v3250_v37  ;;  %v2606_v55 = vadd.f32 %v1164_v54, %v3253_v9  ;;  %v1230_v20 = vmax.f32 %v2572_v10, 0.0  ;;  %v1232_v17 = vmax.f32 %v2604_v45, 0.0 }
 0x2ab   :  { %v1233_v15 = vmax.f32 %v2573_v42, 0.0  ;;  %v1235_v16 = vmax.f32 %v2605_v43, 0.0 }
 0x2ac   :  { %v1234_v2 = vmax.f32 %v2574_v50, 0.0  ;;  %v1236_v18 = vmax.f32 %v2606_v55, 0.0 }
 0x2ad   :  { %v3327_v19 = vpack.c.bf16 %v1233_v15, %v1229_v6  ;;  %v3329_v24 = vpack.c.bf16 %v1235_v16, %v1231_v14 }
 0x2ae   :  { %v3331_v25 = vpack.c.bf16 %v1234_v2, %v1230_v20  ;;  %v3333_v4 = vpack.c.bf16 %v1236_v18, %v1232_v17  ;;  %v942_v0 = vpop.f32.mrb[52].mxu0  ;;  %v1168_v26 = vpop.f32.mrb[52].mxu1 }
 0x2af   :  { %v2575_v58 = vadd.f32 %v942_v0, %v3244_v7  ;;  %v2607_v34 = vadd.f32 %v1168_v26, %v3247_v33  ;;  %v944_v27 = vpop.f32.mrb[53].mxu0  ;;  %v1170_v28 = vpop.f32.mrb[53].mxu1 }
 0x2b0   :  { %v2576_v29 = vadd.f32 %v944_v27, %v3250_v37  ;;  %v2608_v30 = vadd.f32 %v1170_v28, %v3253_v9  ;;  %v946_v11 = vpop.f32.mrb[54].mxu0  ;;  %v1172_v49 = vpop.f32.mrb[54].mxu1 }
 0x2b1   :  { %v2577_v51 = vadd.f32 %v946_v11, %v3244_v7  ;;  %v2609_v21 = vadd.f32 %v1172_v49, %v3247_v33  ;;  %v948_v59 = vpop.f32.mrb[55].mxu0  ;;  %v1174_v52 = vpop.f32.mrb[55].mxu1  ;;  %v1237_v32 = vmax.f32 %v2575_v58, 0.0  ;;  %v1239_v44 = vmax.f32 %v2607_v34, 0.0 }
 0x2b2   :  { %v2578_v53 = vadd.f32 %v948_v59, %v3250_v37  ;;  %v2610_v41 = vadd.f32 %v1174_v52, %v3253_v9  ;;  %v1238_v46 = vmax.f32 %v2576_v29, 0.0  ;;  %v1240_v47 = vmax.f32 %v2608_v30, 0.0 }
 0x2b3   :  { %v1241_v10 = vmax.f32 %v2577_v51, 0.0  ;;  %v1243_v45 = vmax.f32 %v2609_v21, 0.0 }
 0x2b4   :  { %v1242_v42 = vmax.f32 %v2578_v53, 0.0  ;;  %v1244_v43 = vmax.f32 %v2610_v41, 0.0 }
 0x2b5   :  { %v3343_v8 = vpack.c.bf16 %v1241_v10, %v1237_v32  ;;  %v3345_v54 = vpack.c.bf16 %v1243_v45, %v1239_v44 }
 0x2b6   :  { %v3347_v50 = vpack.c.bf16 %v1242_v42, %v1238_v46  ;;  %v3349_v55 = vpack.c.bf16 %v1244_v43, %v1240_v47  ;;  %v952_v6 = vpop.f32.mrb[56].mxu0  ;;  %v1178_v14 = vpop.f32.mrb[56].mxu1 }
 0x2b7   :  { %v2579_v15 = vadd.f32 %v952_v6, %v3244_v7  ;;  %v2611_v16 = vadd.f32 %v1178_v14, %v3247_v33  ;;  %v954_v20 = vpop.f32.mrb[57].mxu0  ;;  %v1180_v17 = vpop.f32.mrb[57].mxu1 }
 0x2b8   :  { %v2580_v2 = vadd.f32 %v954_v20, %v3250_v37  ;;  %v2612_v18 = vadd.f32 %v1180_v17, %v3253_v9  ;;  %v956_v0 = vpop.f32.mrb[58].mxu0  ;;  %v1182_v26 = vpop.f32.mrb[58].mxu1 }
 0x2b9   :  { %v2581_v58 = vadd.f32 %v956_v0, %v3244_v7  ;;  %v2613_v34 = vadd.f32 %v1182_v26, %v3247_v33  ;;  %v958_v27 = vpop.f32.mrb[59].mxu0  ;;  %v1184_v28 = vpop.f32.mrb[59].mxu1  ;;  %v1245_v11 = vmax.f32 %v2579_v15, 0.0  ;;  %v1247_v49 = vmax.f32 %v2611_v16, 0.0 }
 0x2ba   :  { %v2582_v29 = vadd.f32 %v958_v27, %v3250_v37  ;;  %v2614_v30 = vadd.f32 %v1184_v28, %v3253_v9  ;;  %v1246_v59 = vmax.f32 %v2580_v2, 0.0  ;;  %v1248_v52 = vmax.f32 %v2612_v18, 0.0 }
 0x2bb   :  { %v1249_v51 = vmax.f32 %v2581_v58, 0.0  ;;  %v1251_v21 = vmax.f32 %v2613_v34, 0.0 }
 0x2bc   :  { %v1250_v53 = vmax.f32 %v2582_v29, 0.0  ;;  %v1252_v41 = vmax.f32 %v2614_v30, 0.0 }
 0x2bd   :  { %v3359_v32 = vpack.c.bf16 %v1249_v51, %v1245_v11  ;;  %v3361_v44 = vpack.c.bf16 %v1251_v21, %v1247_v49 }
 0x2be   :  { %v3363_v10 = vpack.c.bf16 %v1250_v53, %v1246_v59  ;;  %v3365_v45 = vpack.c.bf16 %v1252_v41, %v1248_v52  ;;  %v962_v46 = vpop.f32.mrb[60].mxu0  ;;  %v1188_v47 = vpop.f32.mrb[60].mxu1 }
 0x2bf   :  { %v2583_v42 = vadd.f32 %v962_v46, %v3244_v7  ;;  %v2615_v43 = vadd.f32 %v1188_v47, %v3247_v33  ;;  %v964_v6 = vpop.f32.mrb[61].mxu0  ;;  %v1190_v14 = vpop.f32.mrb[61].mxu1 }
 0x2c0   :  { %v2584_v15 = vadd.f32 %v964_v6, %v3250_v37  ;;  %v2616_v16 = vadd.f32 %v1190_v14, %v3253_v9  ;;  %v966_v20 = vpop.f32.mrb[62].mxu0  ;;  %v1192_v17 = vpop.f32.mrb[62].mxu1 }
 0x2c1   :  { %v2585_v2 = vadd.f32 %v966_v20, %v3244_v7  ;;  %v2617_v18 = vadd.f32 %v1192_v17, %v3247_v33  ;;  %v968_v0 = vpop.f32.mrb[63].mxu0  ;;  %v1194_v26 = vpop.f32.mrb[63].mxu1  ;;  %v1253_v27 = vmax.f32 %v2583_v42, 0.0  ;;  %v1255_v28 = vmax.f32 %v2615_v43, 0.0 }
 0x2c2   :  { %v2586_v58 = vadd.f32 %v968_v0, %v3250_v37  ;;  %v2618_v34 = vadd.f32 %v1194_v26, %v3253_v9  ;;  %v1254_v11 = vmax.f32 %v2584_v15, 0.0  ;;  %v1256_v49 = vmax.f32 %v2616_v16, 0.0 }
 0x2c3   :  { %v1257_v29 = vmax.f32 %v2585_v2, 0.0  ;;  %v1259_v30 = vmax.f32 %v2617_v18, 0.0 }
 0x2c4   :  { %v1258_v51 = vmax.f32 %v2586_v58, 0.0  ;;  %v1260_v21 = vmax.f32 %v2618_v34, 0.0 }
 0x2c5   :  { %v3375_v59 = vpack.c.bf16 %v1257_v29, %v1253_v27  ;;  %v3377_v52 = vpack.c.bf16 %v1259_v30, %v1255_v28 }
 0x2c6   :  { %v3379_v7 = vpack.c.bf16 %v1258_v51, %v1254_v11  ;;  %v3381_v33 = vpack.c.bf16 %v1260_v21, %v1256_v49 }
 0x2c7   :  { %2853 = dma.done.wait [#allocation6 + $0x1], 16384 }
 0x2c8   :  { %2854 = vsyncadd [#allocation6 + $0x1], 4294950912  ;;  %1541 = vmatprep.mubr.bf16.mxu0 %v3267_v62  ;;  %1767 = vmatprep.mubr.bf16.mxu1 %v3267_v62  ;;  %v1360_v37 = vld [vmem:[#allocation4 + $0x8] sm:$0xff]  ;;  %v1362_v9 = vld [vmem:[#allocation4 + $0x18] sm:$0xff] }
 0x2c9   :  { %v1359_v53 = vld [vmem:[#allocation4] sm:$0xff]  ;;  %1509 = vmatprep.subr.bf16.mxu0 %v1360_v37  ;;  %1735 = vmatprep.subr.bf16.mxu1 %v1362_v9  ;;  %v1361_v41 = vld [vmem:[#allocation4 + $0x10] sm:$0xff]  ;;  %v1364_v46 = vld [vmem:[#allocation4 + $0x28] sm:$0xff] }
 0x2ca   :  { %v1366_v47 = vld [vmem:[#allocation4 + $0x38] sm:$0xff]  ;;  %1510 = vmatpush1.bf16.msra.mxu0 %v1359_v53  ;;  %1736 = vmatpush1.bf16.msra.mxu1 %v1361_v41  ;;  %v1363_v42 = vld [vmem:[#allocation4 + $0x20] sm:$0xff]  ;;  %v1365_v43 = vld [vmem:[#allocation4 + $0x30] sm:$0xff] }
 0x2cb   :  { %1511 = vmatprep.subr.bf16.mxu0 %v1364_v46  ;;  %1737 = vmatprep.subr.bf16.mxu1 %v1366_v47  ;;  %v1368_v6 = vld [vmem:[#allocation4 + $0x48] sm:$0xff]  ;;  %v1370_v14 = vld [vmem:[#allocation4 + $0x58] sm:$0xff]  ;;  %v1367_v62 = vld [vmem:[#allocation4 + $0x40] sm:$0xff] }
 0x2cc   :  { %v1369_v15 = vld [vmem:[#allocation4 + $0x50] sm:$0xff]  ;;  %v1372_v16 = vld [vmem:[#allocation4 + $0x68] sm:$0xff]  ;;  %v1374_v20 = vld [vmem:[#allocation4 + $0x78] sm:$0xff] }
 0x2cd   :  { %v1371_v17 = vld [vmem:[#allocation4 + $0x60] sm:$0xff]  ;;  %v1373_v2 = vld [vmem:[#allocation4 + $0x70] sm:$0xff]  ;;  %v1376_v18 = vld [vmem:[#allocation4 + $0x88] sm:$0xff] }
 0x2ce   :  { %1512 = vmatpush1.bf16.msra.mxu0 %v1363_v42  ;;  %1738 = vmatpush1.bf16.msra.mxu1 %v1365_v43  ;;  %v1378_v0 = vld [vmem:[#allocation4 + $0x98] sm:$0xff]  ;;  %v1375_v26 = vld [vmem:[#allocation4 + $0x80] sm:$0xff]  ;;  %v1377_v58 = vld [vmem:[#allocation4 + $0x90] sm:$0xff] }
 0x2cf   :  { %1513 = vmatprep.subr.bf16.mxu0 %v1368_v6  ;;  %1739 = vmatprep.subr.bf16.mxu1 %v1370_v14  ;;  %v1380_v34 = vld [vmem:[#allocation4 + $0xa8] sm:$0xff]  ;;  %v1382_v27 = vld [vmem:[#allocation4 + $0xb8] sm:$0xff]  ;;  %v1379_v28 = vld [vmem:[#allocation4 + $0xa0] sm:$0xff] }
 0x2d0   :  { %v1381_v29 = vld [vmem:[#allocation4 + $0xb0] sm:$0xff]  ;;  %v1384_v30 = vld [vmem:[#allocation4 + $0xc8] sm:$0xff]  ;;  %v1386_v11 = vld [vmem:[#allocation4 + $0xd8] sm:$0xff] }
 0x2d1   :  { %v1383_v49 = vld [vmem:[#allocation4 + $0xc0] sm:$0xff]  ;;  %v1385_v51 = vld [vmem:[#allocation4 + $0xd0] sm:$0xff]  ;;  %v1388_v21 = vld [vmem:[#allocation4 + $0xe8] sm:$0xff] }
 0x2d2   :  { %1514 = vmatpush1.bf16.msra.mxu0 %v1367_v62  ;;  %1740 = vmatpush1.bf16.msra.mxu1 %v1369_v15  ;;  %v1390_v37 = vld [vmem:[#allocation4 + $0xf8] sm:$0xff]  ;;  %v1387_v9 = vld [vmem:[#allocation4 + $0xe0] sm:$0xff]  ;;  %v1389_v53 = vld [vmem:[#allocation4 + $0xf0] sm:$0xff] }
 0x2d3   :  { %1515 = vmatprep.subr.bf16.mxu0 %v1372_v16  ;;  %1741 = vmatprep.subr.bf16.mxu1 %v1374_v20  ;;  %v1392_v41 = vld [vmem:[#allocation4 + $0x108] sm:$0xff]  ;;  %v1394_v46 = vld [vmem:[#allocation4 + $0x118] sm:$0xff]  ;;  %v1391_v47 = vld [vmem:[#allocation4 + $0x100] sm:$0xff] }
 0x2d4   :  { %v1393_v42 = vld [vmem:[#allocation4 + $0x110] sm:$0xff]  ;;  %v1396_v43 = vld [vmem:[#allocation4 + $0x128] sm:$0xff]  ;;  %v1398_v6 = vld [vmem:[#allocation4 + $0x138] sm:$0xff] }
 0x2d5   :  { %v1395_v14 = vld [vmem:[#allocation4 + $0x120] sm:$0xff]  ;;  %v1397_v62 = vld [vmem:[#allocation4 + $0x130] sm:$0xff]  ;;  %v1400_v15 = vld [vmem:[#allocation4 + $0x148] sm:$0xff] }
 0x2d6   :  { %1516 = vmatpush1.bf16.msra.mxu0 %v1371_v17  ;;  %1742 = vmatpush1.bf16.msra.mxu1 %v1373_v2  ;;  %v1402_v16 = vld [vmem:[#allocation4 + $0x158] sm:$0xff]  ;;  %v1399_v20 = vld [vmem:[#allocation4 + $0x140] sm:$0xff]  ;;  %v1401_v17 = vld [vmem:[#allocation4 + $0x150] sm:$0xff] }
 0x2d7   :  { %1517 = vmatprep.subr.bf16.mxu0 %v1376_v18  ;;  %1743 = vmatprep.subr.bf16.mxu1 %v1378_v0  ;;  %v1404_v2 = vld [vmem:[#allocation4 + $0x168] sm:$0xff]  ;;  %v1406_v18 = vld [vmem:[#allocation4 + $0x178] sm:$0xff]  ;;  %v1403_v0 = vld [vmem:[#allocation4 + $0x160] sm:$0xff] }
 0x2da   :  { %1518 = vmatpush1.bf16.msra.mxu0 %v1375_v26  ;;  %1744 = vmatpush1.bf16.msra.mxu1 %v1377_v58  ;;  %v1405_v26 = vld [vmem:[#allocation4 + $0x170] sm:$0xff]  ;;  %v1408_v58 = vld [vmem:[#allocation4 + $0x188] sm:$0xff] }
 0x2db   :  { %1519 = vmatprep.subr.bf16.mxu0 %v1380_v34  ;;  %1745 = vmatprep.subr.bf16.mxu1 %v1382_v27  ;;  %v1410_v34 = vld [vmem:[#allocation4 + $0x198] sm:$0xff]  ;;  %v1407_v27 = vld [vmem:[#allocation4 + $0x180] sm:$0xff] }
 0x2de   :  { %1520 = vmatpush1.bf16.msra.mxu0 %v1379_v28  ;;  %1746 = vmatpush1.bf16.msra.mxu1 %v1381_v29  ;;  %v1409_v28 = vld [vmem:[#allocation4 + $0x190] sm:$0xff]  ;;  %v1412_v29 = vld [vmem:[#allocation4 + $0x1a8] sm:$0xff] }
 0x2df   :  { %1521 = vmatprep.subr.bf16.mxu0 %v1384_v30  ;;  %1747 = vmatprep.subr.bf16.mxu1 %v1386_v11  ;;  %v1414_v30 = vld [vmem:[#allocation4 + $0x1b8] sm:$0xff]  ;;  %v1411_v11 = vld [vmem:[#allocation4 + $0x1a0] sm:$0xff] }
 0x2e2   :  { %1522 = vmatpush1.bf16.msra.mxu0 %v1383_v49  ;;  %1748 = vmatpush1.bf16.msra.mxu1 %v1385_v51  ;;  %v1413_v49 = vld [vmem:[#allocation4 + $0x1b0] sm:$0xff]  ;;  %v1416_v51 = vld [vmem:[#allocation4 + $0x1c8] sm:$0xff] }
 0x2e3   :  { %1523 = vmatprep.subr.bf16.mxu0 %v1388_v21  ;;  %1749 = vmatprep.subr.bf16.mxu1 %v1390_v37  ;;  %v1418_v21 = vld [vmem:[#allocation4 + $0x1d8] sm:$0xff]  ;;  %v1415_v37 = vld [vmem:[#allocation4 + $0x1c0] sm:$0xff] }
 0x2e6   :  { %1524 = vmatpush1.bf16.msra.mxu0 %v1387_v9  ;;  %1750 = vmatpush1.bf16.msra.mxu1 %v1389_v53  ;;  %v1417_v9 = vld [vmem:[#allocation4 + $0x1d0] sm:$0xff]  ;;  %v1420_v53 = vld [vmem:[#allocation4 + $0x1e8] sm:$0xff] }
 0x2e7   :  { %1525 = vmatprep.subr.bf16.mxu0 %v1392_v41  ;;  %1751 = vmatprep.subr.bf16.mxu1 %v1394_v46  ;;  %v1422_v41 = vld [vmem:[#allocation4 + $0x1f8] sm:$0xff]  ;;  %v1419_v46 = vld [vmem:[#allocation4 + $0x1e0] sm:$0xff] }
 0x2ea   :  { %1526 = vmatpush1.bf16.msra.mxu0 %v1391_v47  ;;  %1752 = vmatpush1.bf16.msra.mxu1 %v1393_v42  ;;  %v1421_v47 = vld [vmem:[#allocation4 + $0x1f0] sm:$0xff]  ;;  %v1424_v42 = vld [vmem:[#allocation4 + $0x208] sm:$0xff] }
 0x2eb   :  { %1527 = vmatprep.subr.bf16.mxu0 %v1396_v43  ;;  %1753 = vmatprep.subr.bf16.mxu1 %v1398_v6  ;;  %v1426_v43 = vld [vmem:[#allocation4 + $0x218] sm:$0xff]  ;;  %v1423_v6 = vld [vmem:[#allocation4 + $0x200] sm:$0xff] }
 0x2ee   :  { %1528 = vmatpush1.bf16.msra.mxu0 %v1395_v14  ;;  %1754 = vmatpush1.bf16.msra.mxu1 %v1397_v62  ;;  %v1425_v14 = vld [vmem:[#allocation4 + $0x210] sm:$0xff]  ;;  %v1428_v62 = vld [vmem:[#allocation4 + $0x228] sm:$0xff] }
 0x2ef   :  { %1529 = vmatprep.subr.bf16.mxu0 %v1400_v15  ;;  %1755 = vmatprep.subr.bf16.mxu1 %v1402_v16  ;;  %v1430_v15 = vld [vmem:[#allocation4 + $0x238] sm:$0xff]  ;;  %v1427_v16 = vld [vmem:[#allocation4 + $0x220] sm:$0xff] }
 0x2f2   :  { %1530 = vmatpush1.bf16.msra.mxu0 %v1399_v20  ;;  %1756 = vmatpush1.bf16.msra.mxu1 %v1401_v17  ;;  %v1429_v20 = vld [vmem:[#allocation4 + $0x230] sm:$0xff]  ;;  %v1432_v17 = vld [vmem:[#allocation4 + $0x248] sm:$0xff] }
 0x2f3   :  { %1531 = vmatprep.subr.bf16.mxu0 %v1404_v2  ;;  %1757 = vmatprep.subr.bf16.mxu1 %v1406_v18  ;;  %v1434_v2 = vld [vmem:[#allocation4 + $0x258] sm:$0xff]  ;;  %v1431_v18 = vld [vmem:[#allocation4 + $0x240] sm:$0xff] }
 0x2f6   :  { %1532 = vmatpush1.bf16.msra.mxu0 %v1403_v0  ;;  %1758 = vmatpush1.bf16.msra.mxu1 %v1405_v26  ;;  %v1433_v0 = vld [vmem:[#allocation4 + $0x250] sm:$0xff]  ;;  %v1436_v26 = vld [vmem:[#allocation4 + $0x268] sm:$0xff] }
 0x2f7   :  { %1533 = vmatprep.subr.bf16.mxu0 %v1408_v58  ;;  %1759 = vmatprep.subr.bf16.mxu1 %v1410_v34  ;;  %v1435_v58 = vld [vmem:[#allocation4 + $0x260] sm:$0xff]  ;;  %v1440_v34 = vld [vmem:[#allocation4 + $0x288] sm:$0xff] }
 0x2fa   :  { %1534 = vmatpush1.bf16.msra.mxu0 %v1407_v27  ;;  %1760 = vmatpush1.bf16.msra.mxu1 %v1409_v28  ;;  %v1442_v27 = vld [vmem:[#allocation4 + $0x298] sm:$0xff]  ;;  %v1439_v28 = vld [vmem:[#allocation4 + $0x280] sm:$0xff] }
 0x2fb   :  { %1535 = vmatprep.subr.bf16.mxu0 %v1412_v29  ;;  %1761 = vmatprep.subr.bf16.mxu1 %v1414_v30  ;;  %v1441_v29 = vld [vmem:[#allocation4 + $0x290] sm:$0xff]  ;;  %v1444_v30 = vld [vmem:[#allocation4 + $0x2a8] sm:$0xff] }
 0x2fe   :  { %1536 = vmatpush1.bf16.msra.mxu0 %v1411_v11  ;;  %1762 = vmatpush1.bf16.msra.mxu1 %v1413_v49  ;;  %v1443_v11 = vld [vmem:[#allocation4 + $0x2a0] sm:$0xff]  ;;  %v1448_v49 = vld [vmem:[#allocation4 + $0x2c8] sm:$0xff] }
 0x2ff   :  { %1537 = vmatprep.subr.bf16.mxu0 %v1416_v51  ;;  %1763 = vmatprep.subr.bf16.mxu1 %v1418_v21  ;;  %v1450_v51 = vld [vmem:[#allocation4 + $0x2d8] sm:$0xff]  ;;  %v1447_v21 = vld [vmem:[#allocation4 + $0x2c0] sm:$0xff] }
 0x302   :  { %1538 = vmatpush1.bf16.msra.mxu0 %v1415_v37  ;;  %1764 = vmatpush1.bf16.msra.mxu1 %v1417_v9  ;;  %v1449_v37 = vld [vmem:[#allocation4 + $0x2d0] sm:$0xff]  ;;  %v1452_v9 = vld [vmem:[#allocation4 + $0x2e8] sm:$0xff] }
 0x303   :  { %1539 = vmatprep.subr.bf16.mxu0 %v1420_v53  ;;  %1765 = vmatprep.subr.bf16.mxu1 %v1422_v41  ;;  %v1451_v53 = vld [vmem:[#allocation4 + $0x2e0] sm:$0xff]  ;;  %v1456_v41 = vld [vmem:[#allocation4 + $0x308] sm:$0xff] }
 0x306   :  { %1540 = vmatpush1.bf16.msra.mxu0 %v1419_v46  ;;  %1766 = vmatpush1.bf16.msra.mxu1 %v1421_v47  ;;  %v1458_v46 = vld [vmem:[#allocation4 + $0x318] sm:$0xff]  ;;  %v1455_v47 = vld [vmem:[#allocation4 + $0x300] sm:$0xff] }
 0x307   :  { %1622 = vmatprep.subr.bf16.mxu0 %v1424_v42  ;;  %1848 = vmatprep.subr.bf16.mxu1 %v1426_v43  ;;  %v1457_v42 = vld [vmem:[#allocation4 + $0x310] sm:$0xff]  ;;  %v1460_v43 = vld [vmem:[#allocation4 + $0x328] sm:$0xff] }
 0x309   :  { %1542 = vmatmul.mubr.bf16.vlgmr.msra.gmra.mrb[64].mxu0 %v3263_v60  ;;  %1768 = vmatmul.mubr.bf16.vlgmr.msra.gmra.mrb[64].mxu1 %v3263_v60  ;;  %v1438_v60 = vld [vmem:[#allocation4 + $0x278] sm:$0xff] }
 0x30a   :  { %1623 = vmatpush1.bf16.msra.mxu0 %v1423_v6  ;;  %1849 = vmatpush1.bf16.msra.mxu1 %v1425_v14  ;;  %v1459_v6 = vld [vmem:[#allocation4 + $0x320] sm:$0xff]  ;;  %v1464_v14 = vld [vmem:[#allocation4 + $0x348] sm:$0xff] }
 0x30b   :  { %1624 = vmatprep.subr.bf16.mxu0 %v1428_v62  ;;  %1850 = vmatprep.subr.bf16.mxu1 %v1430_v15  ;;  %v1466_v62 = vld [vmem:[#allocation4 + $0x358] sm:$0xff]  ;;  %v1463_v15 = vld [vmem:[#allocation4 + $0x340] sm:$0xff] }
 0x30c   :  { %1551 = vmatprep.mubr.bf16.mxu0 %v3283_v40  ;;  %1777 = vmatprep.mubr.bf16.mxu1 %v3283_v40  ;;  %v1437_v40 = vld [vmem:[#allocation4 + $0x270] sm:$0xff] }
 0x30e   :  { %1625 = vmatpush1.bf16.msra.mxu0 %v1427_v16  ;;  %1851 = vmatpush1.bf16.msra.mxu1 %v1429_v20  ;;  %v1465_v16 = vld [vmem:[#allocation4 + $0x350] sm:$0xff]  ;;  %v1468_v20 = vld [vmem:[#allocation4 + $0x368] sm:$0xff] }
 0x30f   :  { %1626 = vmatprep.subr.bf16.mxu0 %v1432_v17  ;;  %1852 = vmatprep.subr.bf16.mxu1 %v1434_v2  ;;  %v1467_v17 = vld [vmem:[#allocation4 + $0x360] sm:$0xff]  ;;  %v1472_v2 = vld [vmem:[#allocation4 + $0x388] sm:$0xff] }
 0x311   :  { %1552 = vmatmul.mubr.bf16.gmra.mrb[68].mxu0 %v3279_v56  ;;  %1778 = vmatmul.mubr.bf16.gmra.mrb[68].mxu1 %v3279_v56  ;;  %v1446_v56 = vld [vmem:[#allocation4 + $0x2b8] sm:$0xff] }
 0x312   :  { %1627 = vmatpush1.bf16.msra.mxu0 %v1431_v18  ;;  %1853 = vmatpush1.bf16.msra.mxu1 %v1433_v0  ;;  %v1474_v18 = vld [vmem:[#allocation4 + $0x398] sm:$0xff]  ;;  %v1471_v0 = vld [vmem:[#allocation4 + $0x380] sm:$0xff] }
 0x313   :  { %1628 = vmatprep.subr.bf16.mxu0 %v1436_v26  ;;  %1854 = vmatprep.subr.bf16.mxu1 %v1438_v60  ;;  %v1473_v26 = vld [vmem:[#allocation4 + $0x390] sm:$0xff]  ;;  %v1476_v60 = vld [vmem:[#allocation4 + $0x3a8] sm:$0xff] }
 0x314   :  { %1561 = vmatprep.mubr.bf16.mxu0 %v3299_v22  ;;  %1787 = vmatprep.mubr.bf16.mxu1 %v3299_v22  ;;  %v1445_v22 = vld [vmem:[#allocation4 + $0x2b0] sm:$0xff] }
 0x316   :  { %1629 = vmatpush1.bf16.msra.mxu0 %v1435_v58  ;;  %1855 = vmatpush1.bf16.msra.mxu1 %v1437_v40  ;;  %v1475_v58 = vld [vmem:[#allocation4 + $0x3a0] sm:$0xff]  ;;  %v1480_v40 = vld [vmem:[#allocation4 + $0x3c8] sm:$0xff] }
 0x317   :  { %1630 = vmatprep.subr.bf16.mxu0 %v1440_v34  ;;  %1856 = vmatprep.subr.bf16.mxu1 %v1442_v27  ;;  %v1482_v34 = vld [vmem:[#allocation4 + $0x3d8] sm:$0xff]  ;;  %v1479_v27 = vld [vmem:[#allocation4 + $0x3c0] sm:$0xff] }
 0x319   :  { %1562 = vmatmul.mubr.bf16.gmra.mrb[72].mxu0 %v3295_v48  ;;  %1788 = vmatmul.mubr.bf16.gmra.mrb[72].mxu1 %v3295_v48  ;;  %v1454_v48 = vld [vmem:[#allocation4 + $0x2f8] sm:$0xff] }
 0x31a   :  { %1631 = vmatpush1.bf16.msra.mxu0 %v1439_v28  ;;  %1857 = vmatpush1.bf16.msra.mxu1 %v1441_v29  ;;  %v1481_v28 = vld [vmem:[#allocation4 + $0x3d0] sm:$0xff]  ;;  %v1484_v29 = vld [vmem:[#allocation4 + $0x3e8] sm:$0xff] }
 0x31b   :  { %1632 = vmatprep.subr.bf16.mxu0 %v1444_v30  ;;  %1858 = vmatprep.subr.bf16.mxu1 %v1446_v56  ;;  %v1483_v30 = vld [vmem:[#allocation4 + $0x3e0] sm:$0xff] }
 0x31c   :  { %1571 = vmatprep.mubr.bf16.mxu0 %v3315_v3  ;;  %1797 = vmatprep.mubr.bf16.mxu1 %v3315_v3  ;;  %v1453_v3 = vld [vmem:[#allocation4 + $0x2f0] sm:$0xff] }
 0x31e   :  { %1633 = vmatpush1.bf16.msra.mxu0 %v1443_v11  ;;  %1859 = vmatpush1.bf16.msra.mxu1 %v1445_v22 }
 0x31f   :  { %1634 = vmatprep.subr.bf16.mxu0 %v1448_v49  ;;  %1860 = vmatprep.subr.bf16.mxu1 %v1450_v51 }
 0x321   :  { %1572 = vmatmul.mubr.bf16.gmra.mrb[76].mxu0 %v3311_v23  ;;  %1798 = vmatmul.mubr.bf16.gmra.mrb[76].mxu1 %v3311_v23  ;;  %v1462_v23 = vld [vmem:[#allocation4 + $0x338] sm:$0xff] }
 0x322   :  { %1635 = vmatpush1.bf16.msra.mxu0 %v1447_v21  ;;  %1861 = vmatpush1.bf16.msra.mxu1 %v1449_v37 }
 0x323   :  { %1636 = vmatprep.subr.bf16.mxu0 %v1452_v9  ;;  %1862 = vmatprep.subr.bf16.mxu1 %v1454_v48 }
 0x324   :  { %1581 = vmatprep.mubr.bf16.mxu0 %v3331_v25  ;;  %1807 = vmatprep.mubr.bf16.mxu1 %v3331_v25  ;;  %v1461_v25 = vld [vmem:[#allocation4 + $0x330] sm:$0xff] }
 0x326   :  { %1637 = vmatpush1.bf16.msra.mxu0 %v1451_v53  ;;  %1863 = vmatpush1.bf16.msra.mxu1 %v1453_v3 }
 0x327   :  { %1638 = vmatprep.subr.bf16.mxu0 %v1456_v41  ;;  %1864 = vmatprep.subr.bf16.mxu1 %v1458_v46 }
 0x329   :  { %1582 = vmatmul.mubr.bf16.gmra.mrb[80].mxu0 %v3327_v19  ;;  %1808 = vmatmul.mubr.bf16.gmra.mrb[80].mxu1 %v3327_v19  ;;  %v1470_v19 = vld [vmem:[#allocation4 + $0x378] sm:$0xff] }
 0x32a   :  { %1639 = vmatpush1.bf16.msra.mxu0 %v1455_v47  ;;  %1865 = vmatpush1.bf16.msra.mxu1 %v1457_v42 }
 0x32b   :  { %1640 = vmatprep.subr.bf16.mxu0 %v1460_v43  ;;  %1866 = vmatprep.subr.bf16.mxu1 %v1462_v23 }
 0x32c   :  { %1591 = vmatprep.mubr.bf16.mxu0 %v3347_v50  ;;  %1817 = vmatprep.mubr.bf16.mxu1 %v3347_v50  ;;  %v1469_v50 = vld [vmem:[#allocation4 + $0x370] sm:$0xff] }
 0x32e   :  { %1641 = vmatpush1.bf16.msra.mxu0 %v1459_v6  ;;  %1867 = vmatpush1.bf16.msra.mxu1 %v1461_v25 }
 0x32f   :  { %1642 = vmatprep.subr.bf16.mxu0 %v1464_v14  ;;  %1868 = vmatprep.subr.bf16.mxu1 %v1466_v62 }
 0x331   :  { %1592 = vmatmul.mubr.bf16.gmra.mrb[84].mxu0 %v3343_v8  ;;  %1818 = vmatmul.mubr.bf16.gmra.mrb[84].mxu1 %v3343_v8  ;;  %v1478_v8 = vld [vmem:[#allocation4 + $0x3b8] sm:$0xff] }
 0x332   :  { %1643 = vmatpush1.bf16.msra.mxu0 %v1463_v15  ;;  %1869 = vmatpush1.bf16.msra.mxu1 %v1465_v16 }
 0x333   :  { %1644 = vmatprep.subr.bf16.mxu0 %v1468_v20  ;;  %1870 = vmatprep.subr.bf16.mxu1 %v1470_v19 }
 0x334   :  { %1601 = vmatprep.mubr.bf16.mxu0 %v3363_v10  ;;  %1827 = vmatprep.mubr.bf16.mxu1 %v3363_v10  ;;  %v1477_v10 = vld [vmem:[#allocation4 + $0x3b0] sm:$0xff] }
 0x336   :  { %1645 = vmatpush1.bf16.msra.mxu0 %v1467_v17  ;;  %1871 = vmatpush1.bf16.msra.mxu1 %v1469_v50 }
 0x337   :  { %1646 = vmatprep.subr.bf16.mxu0 %v1472_v2  ;;  %1872 = vmatprep.subr.bf16.mxu1 %v1474_v18 }
 0x339   :  { %1602 = vmatmul.mubr.bf16.gmra.mrb[88].mxu0 %v3359_v32  ;;  %1828 = vmatmul.mubr.bf16.gmra.mrb[88].mxu1 %v3359_v32  ;;  %v1486_v32 = vld [vmem:[#allocation4 + $0x3f8] sm:$0xff] }
 0x33a   :  { %1647 = vmatpush1.bf16.msra.mxu0 %v1471_v0  ;;  %1873 = vmatpush1.bf16.msra.mxu1 %v1473_v26 }
 0x33b   :  { %1648 = vmatprep.subr.bf16.mxu0 %v1476_v60  ;;  %1874 = vmatprep.subr.bf16.mxu1 %v1478_v8 }
 0x33c   :  { %1611 = vmatprep.mubr.bf16.mxu0 %v3379_v7  ;;  %1837 = vmatprep.mubr.bf16.mxu1 %v3379_v7  ;;  %v1485_v7 = vld [vmem:[#allocation4 + $0x3f0] sm:$0xff] }
 0x33e   :  { %1649 = vmatpush1.bf16.msra.mxu0 %v1475_v58  ;;  %1875 = vmatpush1.bf16.msra.mxu1 %v1477_v10 }
 0x33f   :  { %1650 = vmatprep.subr.bf16.mxu0 %v1480_v40  ;;  %1876 = vmatprep.subr.bf16.mxu1 %v1482_v34 }
 0x341   :  { %1612 = vmatmul.mubr.bf16.gmra.mrb[92].mxu0 %v3375_v59  ;;  %1838 = vmatmul.mubr.bf16.gmra.mrb[92].mxu1 %v3375_v59 }
 0x342   :  { %1651 = vmatpush1.bf16.msra.mxu0 %v1479_v27  ;;  %1877 = vmatpush1.bf16.msra.mxu1 %v1481_v28 }
 0x343   :  { %1652 = vmatprep.subr.bf16.mxu0 %v1484_v29  ;;  %1878 = vmatprep.subr.bf16.mxu1 %v1486_v32 }
 0x344   :  { %1654 = vmatprep.mubr.bf16.mxu0 %v3269_v63  ;;  %1880 = vmatprep.mubr.bf16.mxu1 %v3269_v63 }
 0x346   :  { %1653 = vmatpush1.bf16.msra.mxu0 %v1483_v30  ;;  %1879 = vmatpush1.bf16.msra.mxu1 %v1485_v7 }
 0x349   :  { %1655 = vmatmul.mubr.bf16.vlgmr.msra.gmra.mrb[64].mxu0 %v3265_v61  ;;  %1881 = vmatmul.mubr.bf16.vlgmr.msra.gmra.mrb[64].mxu1 %v3265_v61  ;;  %v1487_v61 = vld [vmem:[%s3695_s4] sm:$0xf] }
 0x34a   :  { %1664 = vmatprep.mubr.bf16.mxu0 %v3285_v5  ;;  %1890 = vmatprep.mubr.bf16.mxu1 %v3285_v5  ;;  %v3451_v63 = vrot.slane %v1487_v61, %v3025_v35  ;;  %v3457_v5 = vrot.slane %v1487_v61, %v3032_v38 }
 0x351   :  { %1665 = vmatmul.mubr.bf16.gmra.mrb[68].mxu0 %v3281_v31  ;;  %1891 = vmatmul.mubr.bf16.gmra.mrb[68].mxu1 %v3281_v31  ;;  %v3454_v31 = vrot.slane %v1487_v61, %v3027_v36 }
 0x352   :  { %1674 = vmatprep.mubr.bf16.mxu0 %v3301_v13  ;;  %1900 = vmatprep.mubr.bf16.mxu1 %v3301_v13 }
 0x359   :  { %1675 = vmatmul.mubr.bf16.gmra.mrb[72].mxu0 %v3297_v12  ;;  %1901 = vmatmul.mubr.bf16.gmra.mrb[72].mxu1 %v3297_v12  ;;  %v3460_v12 = vrot.slane %v1487_v61, %v3034_v39 }
 0x35a   :  { %1684 = vmatprep.mubr.bf16.mxu0 %v3317_v57  ;;  %1910 = vmatprep.mubr.bf16.mxu1 %v3317_v57 }
 0x361   :  { %1685 = vmatmul.mubr.bf16.gmra.mrb[76].mxu0 %v3313_v1  ;;  %1911 = vmatmul.mubr.bf16.gmra.mrb[76].mxu1 %v3313_v1 }
 0x362   :  { %1694 = vmatprep.mubr.bf16.mxu0 %v3333_v4  ;;  %1920 = vmatprep.mubr.bf16.mxu1 %v3333_v4 }
 0x369   :  { %1695 = vmatmul.mubr.bf16.gmra.mrb[80].mxu0 %v3329_v24  ;;  %1921 = vmatmul.mubr.bf16.gmra.mrb[80].mxu1 %v3329_v24 }
 0x36a   :  { %1704 = vmatprep.mubr.bf16.mxu0 %v3349_v55  ;;  %1930 = vmatprep.mubr.bf16.mxu1 %v3349_v55 }
 0x371   :  { %1705 = vmatmul.mubr.bf16.gmra.mrb[84].mxu0 %v3345_v54  ;;  %1931 = vmatmul.mubr.bf16.gmra.mrb[84].mxu1 %v3345_v54 }
 0x372   :  { %1714 = vmatprep.mubr.bf16.mxu0 %v3365_v45  ;;  %1940 = vmatprep.mubr.bf16.mxu1 %v3365_v45 }
 0x379   :  { %1715 = vmatmul.mubr.bf16.gmra.mrb[88].mxu0 %v3361_v44  ;;  %1941 = vmatmul.mubr.bf16.gmra.mrb[88].mxu1 %v3361_v44 }
 0x37a   :  { %1724 = vmatprep.mubr.bf16.mxu0 %v3381_v33  ;;  %1950 = vmatprep.mubr.bf16.mxu1 %v3381_v33 }
 0x381   :  { %1725 = vmatmul.mubr.bf16.gmra.mrb[92].mxu0 %v3377_v52  ;;  %1951 = vmatmul.mubr.bf16.gmra.mrb[92].mxu1 %v3377_v52 }
 0x41c   :  { %v1656_v13 = vpop.f32.mrb[64].mxu0  ;;  %v1882_v1 = vpop.f32.mrb[64].mxu1 }
 0x41d   :  { %v2619_v57 = vadd.f32 %v1656_v13, %v3451_v63  ;;  %v2651_v24 = vadd.f32 %v1882_v1, %v3454_v31  ;;  %v1658_v4 = vpop.f32.mrb[65].mxu0  ;;  %v1884_v54 = vpop.f32.mrb[65].mxu1 }
 0x41e   :  { %v2620_v35 = vadd.f32 %v1658_v4, %v3457_v5  ;;  %v2652_v55 = vadd.f32 %v1884_v54, %v3460_v12  ;;  %v1660_v36 = vpop.f32.mrb[66].mxu0  ;;  %v1886_v44 = vpop.f32.mrb[66].mxu1 }
 0x41f   :  { %v2621_v38 = vadd.f32 %v1660_v36, %v3451_v63  ;;  %v2653_v45 = vadd.f32 %v1886_v44, %v3454_v31  ;;  %v1662_v39 = vpop.f32.mrb[67].mxu0  ;;  %v1888_v59 = vpop.f32.mrb[67].mxu1  ;;  %v1961_v56 = vmax.f32 %v2619_v57, 0.0  ;;  %v1963_v11 = vmax.f32 %v2651_v24, 0.0 }
 0x420   :  { %v2622_v52 = vadd.f32 %v1662_v39, %v3457_v5  ;;  %v2654_v33 = vadd.f32 %v1888_v59, %v3460_v12  ;;  %v1962_v51 = vmax.f32 %v2620_v35, 0.0  ;;  %v1964_v21 = vmax.f32 %v2652_v55, 0.0 }
 0x421   :  { %v1965_v22 = vmax.f32 %v2621_v38, 0.0  ;;  %v1967_v49 = vmax.f32 %v2653_v45, 0.0 }
 0x422   :  { %v1966_v37 = vmax.f32 %v2622_v52, 0.0  ;;  %v1968_v9 = vmax.f32 %v2654_v33, 0.0 }
 0x423   :  { %v3470_v48 = vpack.c.bf16 %v1965_v22, %v1961_v56  ;;  %v3472_v53 = vpack.c.bf16 %v1967_v49, %v1963_v11 }
 0x424   :  { %v3474_v3 = vpack.c.bf16 %v1966_v37, %v1962_v51  ;;  %v3476_v41 = vpack.c.bf16 %v1968_v9, %v1964_v21  ;;  %v1666_v46 = vpop.f32.mrb[68].mxu0  ;;  %v1892_v47 = vpop.f32.mrb[68].mxu1 }
 0x425   :  { %v2623_v42 = vadd.f32 %v1666_v46, %v3451_v63  ;;  %v2655_v43 = vadd.f32 %v1892_v47, %v3454_v31  ;;  %v1668_v23 = vpop.f32.mrb[69].mxu0  ;;  %v1894_v6 = vpop.f32.mrb[69].mxu1 }
 0x426   :  { %v2624_v25 = vadd.f32 %v1668_v23, %v3457_v5  ;;  %v2656_v14 = vadd.f32 %v1894_v6, %v3460_v12  ;;  %v1670_v62 = vpop.f32.mrb[70].mxu0  ;;  %v1896_v15 = vpop.f32.mrb[70].mxu1 }
 0x427   :  { %v2625_v16 = vadd.f32 %v1670_v62, %v3451_v63  ;;  %v2657_v20 = vadd.f32 %v1896_v15, %v3454_v31  ;;  %v1672_v19 = vpop.f32.mrb[71].mxu0  ;;  %v1898_v17 = vpop.f32.mrb[71].mxu1  ;;  %v1969_v18 = vmax.f32 %v2623_v42, 0.0  ;;  %v1971_v0 = vmax.f32 %v2655_v43, 0.0 }
 0x428   :  { %v2626_v50 = vadd.f32 %v1672_v19, %v3457_v5  ;;  %v2658_v2 = vadd.f32 %v1898_v17, %v3460_v12  ;;  %v1970_v8 = vmax.f32 %v2624_v25, 0.0  ;;  %v1972_v58 = vmax.f32 %v2656_v14, 0.0 }
 0x429   :  { %v1973_v26 = vmax.f32 %v2625_v16, 0.0  ;;  %v1975_v60 = vmax.f32 %v2657_v20, 0.0 }
 0x42a   :  { %v1974_v10 = vmax.f32 %v2626_v50, 0.0  ;;  %v1976_v40 = vmax.f32 %v2658_v2, 0.0 }
 0x42b   :  { %v3486_v34 = vpack.c.bf16 %v1973_v26, %v1969_v18  ;;  %v3488_v27 = vpack.c.bf16 %v1975_v60, %v1971_v0 }
 0x42c   :  { %v3490_v28 = vpack.c.bf16 %v1974_v10, %v1970_v8  ;;  %v3492_v29 = vpack.c.bf16 %v1976_v40, %v1972_v58  ;;  %v1676_v32 = vpop.f32.mrb[72].mxu0  ;;  %v1902_v30 = vpop.f32.mrb[72].mxu1 }
 0x42d   :  { %v2627_v7 = vadd.f32 %v1676_v32, %v3451_v63  ;;  %v2659_v61 = vadd.f32 %v1902_v30, %v3454_v31  ;;  %v1678_v13 = vpop.f32.mrb[73].mxu0  ;;  %v1904_v1 = vpop.f32.mrb[73].mxu1 }
 0x42e   :  { %v2628_v57 = vadd.f32 %v1678_v13, %v3457_v5  ;;  %v2660_v24 = vadd.f32 %v1904_v1, %v3460_v12  ;;  %v1680_v4 = vpop.f32.mrb[74].mxu0  ;;  %v1906_v54 = vpop.f32.mrb[74].mxu1 }
 0x42f   :  { %v2629_v35 = vadd.f32 %v1680_v4, %v3451_v63  ;;  %v2661_v55 = vadd.f32 %v1906_v54, %v3454_v31  ;;  %v1682_v36 = vpop.f32.mrb[75].mxu0  ;;  %v1908_v44 = vpop.f32.mrb[75].mxu1  ;;  %v1977_v39 = vmax.f32 %v2627_v7, 0.0  ;;  %v1979_v59 = vmax.f32 %v2659_v61, 0.0 }
 0x430   :  { %v2630_v38 = vadd.f32 %v1682_v36, %v3457_v5  ;;  %v2662_v45 = vadd.f32 %v1908_v44, %v3460_v12  ;;  %v1978_v56 = vmax.f32 %v2628_v57, 0.0  ;;  %v1980_v11 = vmax.f32 %v2660_v24, 0.0 }
 0x431   :  { %v1981_v52 = vmax.f32 %v2629_v35, 0.0  ;;  %v1983_v33 = vmax.f32 %v2661_v55, 0.0 }
 0x432   :  { %v1982_v22 = vmax.f32 %v2630_v38, 0.0  ;;  %v1984_v49 = vmax.f32 %v2662_v45, 0.0 }
 0x433   :  { %v3502_v51 = vpack.c.bf16 %v1981_v52, %v1977_v39  ;;  %v3504_v21 = vpack.c.bf16 %v1983_v33, %v1979_v59 }
 0x434   :  { %v3506_v37 = vpack.c.bf16 %v1982_v22, %v1978_v56  ;;  %v3508_v9 = vpack.c.bf16 %v1984_v49, %v1980_v11  ;;  %v1686_v46 = vpop.f32.mrb[76].mxu0  ;;  %v1912_v47 = vpop.f32.mrb[76].mxu1 }
 0x435   :  { %v2631_v42 = vadd.f32 %v1686_v46, %v3451_v63  ;;  %v2663_v43 = vadd.f32 %v1912_v47, %v3454_v31  ;;  %v1688_v23 = vpop.f32.mrb[77].mxu0  ;;  %v1914_v6 = vpop.f32.mrb[77].mxu1 }
 0x436   :  { %v2632_v25 = vadd.f32 %v1688_v23, %v3457_v5  ;;  %v2664_v14 = vadd.f32 %v1914_v6, %v3460_v12  ;;  %v1690_v62 = vpop.f32.mrb[78].mxu0  ;;  %v1916_v15 = vpop.f32.mrb[78].mxu1 }
 0x437   :  { %v2633_v16 = vadd.f32 %v1690_v62, %v3451_v63  ;;  %v2665_v20 = vadd.f32 %v1916_v15, %v3454_v31  ;;  %v1692_v19 = vpop.f32.mrb[79].mxu0  ;;  %v1918_v17 = vpop.f32.mrb[79].mxu1  ;;  %v1985_v18 = vmax.f32 %v2631_v42, 0.0  ;;  %v1987_v0 = vmax.f32 %v2663_v43, 0.0 }
 0x438   :  { %v2634_v50 = vadd.f32 %v1692_v19, %v3457_v5  ;;  %v2666_v2 = vadd.f32 %v1918_v17, %v3460_v12  ;;  %v1986_v8 = vmax.f32 %v2632_v25, 0.0  ;;  %v1988_v58 = vmax.f32 %v2664_v14, 0.0 }
 0x439   :  { %v1989_v26 = vmax.f32 %v2633_v16, 0.0  ;;  %v1991_v60 = vmax.f32 %v2665_v20, 0.0 }
 0x43a   :  { %v1990_v10 = vmax.f32 %v2634_v50, 0.0  ;;  %v1992_v40 = vmax.f32 %v2666_v2, 0.0 }
 0x43b   :  { %v3518_v32 = vpack.c.bf16 %v1989_v26, %v1985_v18  ;;  %v3520_v30 = vpack.c.bf16 %v1991_v60, %v1987_v0 }
 0x43c   :  { %v3522_v7 = vpack.c.bf16 %v1990_v10, %v1986_v8  ;;  %v3524_v61 = vpack.c.bf16 %v1992_v40, %v1988_v58  ;;  %v1696_v13 = vpop.f32.mrb[80].mxu0  ;;  %v1922_v1 = vpop.f32.mrb[80].mxu1 }
 0x43d   :  { %v2635_v57 = vadd.f32 %v1696_v13, %v3451_v63  ;;  %v2667_v24 = vadd.f32 %v1922_v1, %v3454_v31  ;;  %v1698_v4 = vpop.f32.mrb[81].mxu0  ;;  %v1924_v54 = vpop.f32.mrb[81].mxu1 }
 0x43e   :  { %v2636_v35 = vadd.f32 %v1698_v4, %v3457_v5  ;;  %v2668_v55 = vadd.f32 %v1924_v54, %v3460_v12  ;;  %v1700_v36 = vpop.f32.mrb[82].mxu0  ;;  %v1926_v44 = vpop.f32.mrb[82].mxu1 }
 0x43f   :  { %v2637_v38 = vadd.f32 %v1700_v36, %v3451_v63  ;;  %v2669_v45 = vadd.f32 %v1926_v44, %v3454_v31  ;;  %v1702_v39 = vpop.f32.mrb[83].mxu0  ;;  %v1928_v59 = vpop.f32.mrb[83].mxu1  ;;  %v1993_v56 = vmax.f32 %v2635_v57, 0.0  ;;  %v1995_v11 = vmax.f32 %v2667_v24, 0.0 }
 0x440   :  { %v2638_v52 = vadd.f32 %v1702_v39, %v3457_v5  ;;  %v2670_v33 = vadd.f32 %v1928_v59, %v3460_v12  ;;  %v1994_v46 = vmax.f32 %v2636_v35, 0.0  ;;  %v1996_v47 = vmax.f32 %v2668_v55, 0.0 }
 0x441   :  { %v1997_v22 = vmax.f32 %v2637_v38, 0.0  ;;  %v1999_v49 = vmax.f32 %v2669_v45, 0.0 }
 0x442   :  { %v1998_v42 = vmax.f32 %v2638_v52, 0.0  ;;  %v2000_v43 = vmax.f32 %v2670_v33, 0.0 }
 0x443   :  { %v3534_v23 = vpack.c.bf16 %v1997_v22, %v1993_v56  ;;  %v3536_v6 = vpack.c.bf16 %v1999_v49, %v1995_v11 }
 0x444   :  { %v3538_v25 = vpack.c.bf16 %v1998_v42, %v1994_v46  ;;  %v3540_v14 = vpack.c.bf16 %v2000_v43, %v1996_v47  ;;  %v1706_v62 = vpop.f32.mrb[84].mxu0  ;;  %v1932_v15 = vpop.f32.mrb[84].mxu1 }
 0x445   :  { %v2639_v16 = vadd.f32 %v1706_v62, %v3451_v63  ;;  %v2671_v20 = vadd.f32 %v1932_v15, %v3454_v31  ;;  %v1708_v19 = vpop.f32.mrb[85].mxu0  ;;  %v1934_v17 = vpop.f32.mrb[85].mxu1 }
 0x446   :  { %v2640_v50 = vadd.f32 %v1708_v19, %v3457_v5  ;;  %v2672_v2 = vadd.f32 %v1934_v17, %v3460_v12  ;;  %v1710_v18 = vpop.f32.mrb[86].mxu0  ;;  %v1936_v0 = vpop.f32.mrb[86].mxu1 }
 0x447   :  { %v2641_v26 = vadd.f32 %v1710_v18, %v3451_v63  ;;  %v2673_v60 = vadd.f32 %v1936_v0, %v3454_v31  ;;  %v1712_v8 = vpop.f32.mrb[87].mxu0  ;;  %v1938_v58 = vpop.f32.mrb[87].mxu1  ;;  %v2001_v13 = vmax.f32 %v2639_v16, 0.0  ;;  %v2003_v1 = vmax.f32 %v2671_v20, 0.0 }
 0x448   :  { %v2642_v10 = vadd.f32 %v1712_v8, %v3457_v5  ;;  %v2674_v40 = vadd.f32 %v1938_v58, %v3460_v12  ;;  %v2002_v4 = vmax.f32 %v2640_v50, 0.0  ;;  %v2004_v54 = vmax.f32 %v2672_v2, 0.0 }
 0x449   :  { %v2005_v57 = vmax.f32 %v2641_v26, 0.0  ;;  %v2007_v24 = vmax.f32 %v2673_v60, 0.0 }
 0x44a   :  { %v2006_v35 = vmax.f32 %v2642_v10, 0.0  ;;  %v2008_v55 = vmax.f32 %v2674_v40, 0.0 }
 0x44b   :  { %v3550_v36 = vpack.c.bf16 %v2005_v57, %v2001_v13  ;;  %v3552_v44 = vpack.c.bf16 %v2007_v24, %v2003_v1 }
 0x44c   :  { %v3554_v38 = vpack.c.bf16 %v2006_v35, %v2002_v4  ;;  %v3556_v45 = vpack.c.bf16 %v2008_v55, %v2004_v54  ;;  %v1716_v39 = vpop.f32.mrb[88].mxu0  ;;  %v1942_v59 = vpop.f32.mrb[88].mxu1 }
 0x44d   :  { %v2643_v52 = vadd.f32 %v1716_v39, %v3451_v63  ;;  %v2675_v33 = vadd.f32 %v1942_v59, %v3454_v31  ;;  %v1718_v56 = vpop.f32.mrb[89].mxu0  ;;  %v1944_v11 = vpop.f32.mrb[89].mxu1 }
 0x44e   :  { %v2644_v22 = vadd.f32 %v1718_v56, %v3457_v5  ;;  %v2676_v49 = vadd.f32 %v1944_v11, %v3460_v12  ;;  %v1720_v46 = vpop.f32.mrb[90].mxu0  ;;  %v1946_v47 = vpop.f32.mrb[90].mxu1 }
 0x44f   :  { %v2645_v42 = vadd.f32 %v1720_v46, %v3451_v63  ;;  %v2677_v43 = vadd.f32 %v1946_v47, %v3454_v31  ;;  %v1722_v62 = vpop.f32.mrb[91].mxu0  ;;  %v1948_v15 = vpop.f32.mrb[91].mxu1  ;;  %v2009_v19 = vmax.f32 %v2643_v52, 0.0  ;;  %v2011_v17 = vmax.f32 %v2675_v33, 0.0 }
 0x450   :  { %v2646_v16 = vadd.f32 %v1722_v62, %v3457_v5  ;;  %v2678_v20 = vadd.f32 %v1948_v15, %v3460_v12  ;;  %v2010_v18 = vmax.f32 %v2644_v22, 0.0  ;;  %v2012_v0 = vmax.f32 %v2676_v49, 0.0 }
 0x451   :  { %v2013_v50 = vmax.f32 %v2645_v42, 0.0  ;;  %v2015_v2 = vmax.f32 %v2677_v43, 0.0 }
 0x452   :  { %v2014_v26 = vmax.f32 %v2646_v16, 0.0  ;;  %v2016_v60 = vmax.f32 %v2678_v20, 0.0 }
 0x453   :  { %v3566_v8 = vpack.c.bf16 %v2013_v50, %v2009_v19  ;;  %v3568_v58 = vpack.c.bf16 %v2015_v2, %v2011_v17 }
 0x454   :  { %v3570_v10 = vpack.c.bf16 %v2014_v26, %v2010_v18  ;;  %v3572_v40 = vpack.c.bf16 %v2016_v60, %v2012_v0  ;;  %v1726_v13 = vpop.f32.mrb[92].mxu0  ;;  %v1952_v1 = vpop.f32.mrb[92].mxu1 }
 0x455   :  { %v2647_v57 = vadd.f32 %v1726_v13, %v3451_v63  ;;  %v2679_v24 = vadd.f32 %v1952_v1, %v3454_v31  ;;  %v1728_v4 = vpop.f32.mrb[93].mxu0  ;;  %v1954_v54 = vpop.f32.mrb[93].mxu1 }
 0x456   :  { %v2648_v35 = vadd.f32 %v1728_v4, %v3457_v5  ;;  %v2680_v55 = vadd.f32 %v1954_v54, %v3460_v12  ;;  %v1730_v39 = vpop.f32.mrb[94].mxu0  ;;  %v1956_v59 = vpop.f32.mrb[94].mxu1 }
 0x457   :  { %v2649_v52 = vadd.f32 %v1730_v39, %v3451_v63  ;;  %v2681_v33 = vadd.f32 %v1956_v59, %v3454_v31  ;;  %v1732_v56 = vpop.f32.mrb[95].mxu0  ;;  %v1958_v11 = vpop.f32.mrb[95].mxu1  ;;  %v2017_v46 = vmax.f32 %v2647_v57, 0.0  ;;  %v2019_v47 = vmax.f32 %v2679_v24, 0.0 }
 0x458   :  { %v2650_v22 = vadd.f32 %v1732_v56, %v3457_v5  ;;  %v2682_v49 = vadd.f32 %v1958_v11, %v3460_v12  ;;  %v2018_v62 = vmax.f32 %v2648_v35, 0.0  ;;  %v2020_v15 = vmax.f32 %v2680_v55, 0.0 }
 0x459   :  { %v2021_v42 = vmax.f32 %v2649_v52, 0.0  ;;  %v2023_v43 = vmax.f32 %v2681_v33, 0.0 }
 0x45a   :  { %v2022_v16 = vmax.f32 %v2650_v22, 0.0  ;;  %v2024_v20 = vmax.f32 %v2682_v49, 0.0 }
 0x45b   :  { %v3582_v19 = vpack.c.bf16 %v2021_v42, %v2017_v46  ;;  %v3584_v17 = vpack.c.bf16 %v2023_v43, %v2019_v47 }
 0x45c   :  { %v3586_v63 = vpack.c.bf16 %v2022_v16, %v2018_v62  ;;  %v3588_v31 = vpack.c.bf16 %v2024_v20, %v2020_v15 }
 0x45d   :  { %2855 = dma.done.wait [#allocation6 + $0x2], 4096 }
 0x45e   :  { %2856 = vsyncadd [#allocation6 + $0x2], 4294963200  ;;  %2195 = vmatprep.mubr.bf16.mxu0 %v3474_v3  ;;  %2292 = vmatprep.mubr.bf16.mxu1 %v3476_v41  ;;  %v2132_v5 = vld [vmem:[#allocation5 + $0x40] sm:$0xff]  ;;  %v2133_v18 = vld [vmem:[#allocation5 + $0x48] sm:$0xff] }
 0x45f   :  { %v2148_v12 = vld [vmem:[#allocation5 + $0xc0] sm:$0xff]  ;;  %2427 = vmatprep.subr.bf16.mxu0 %v2132_v5  ;;  %v2149_v0 = vld [vmem:[#allocation5 + $0xc8] sm:$0xff]  ;;  %v2134_v13 = vld [vmem:[#allocation5 + $0x50] sm:$0xff] }
 0x460   :  { %v2124_v50 = vld [vmem:[#allocation5] sm:$0xff]  ;;  %2491 = vmatprep.subr.bf16.mxu1 %v2148_v12  ;;  %v2125_v26 = vld [vmem:[#allocation5 + $0x8] sm:$0xff]  ;;  %v2150_v1 = vld [vmem:[#allocation5 + $0xd0] sm:$0xff] }
 0x461   :  { %v2140_v2 = vld [vmem:[#allocation5 + $0x80] sm:$0xff]  ;;  %2428 = vmatpush3.bf16.msra.mxu0 %v2124_v50  ;;  %v2141_v60 = vld [vmem:[#allocation5 + $0x88] sm:$0xff]  ;;  %v2126_v3 = vld [vmem:[#allocation5 + $0x10] sm:$0xff] }
 0x462   :  { %2492 = vmatpush3.bf16.msra.mxu1 %v2140_v2  ;;  %2429 = vmatprep.subr.bf16.mxu0 %v2133_v18  ;;  %v2142_v41 = vld [vmem:[#allocation5 + $0x90] sm:$0xff]  ;;  %v2135_v57 = vld [vmem:[#allocation5 + $0x58] sm:$0xff]  ;;  %v2136_v35 = vld [vmem:[#allocation5 + $0x60] sm:$0xff] }
 0x463   :  { %2493 = vmatprep.subr.bf16.mxu1 %v2149_v0  ;;  %v2151_v24 = vld [vmem:[#allocation5 + $0xd8] sm:$0xff]  ;;  %v2152_v55 = vld [vmem:[#allocation5 + $0xe0] sm:$0xff]  ;;  %v2137_v52 = vld [vmem:[#allocation5 + $0x68] sm:$0xff] }
 0x464   :  { %v2127_v4 = vld [vmem:[#allocation5 + $0x18] sm:$0xff]  ;;  %v2128_v39 = vld [vmem:[#allocation5 + $0x20] sm:$0xff]  ;;  %v2153_v33 = vld [vmem:[#allocation5 + $0xe8] sm:$0xff] }
 0x465   :  { %2430 = vmatpush3.bf16.msra.mxu0 %v2125_v26  ;;  %v2143_v54 = vld [vmem:[#allocation5 + $0x98] sm:$0xff]  ;;  %v2144_v59 = vld [vmem:[#allocation5 + $0xa0] sm:$0xff]  ;;  %v2129_v56 = vld [vmem:[#allocation5 + $0x28] sm:$0xff] }
 0x466   :  { %2494 = vmatpush3.bf16.msra.mxu1 %v2141_v60  ;;  %2431 = vmatprep.subr.bf16.mxu0 %v2134_v13  ;;  %v2145_v11 = vld [vmem:[#allocation5 + $0xa8] sm:$0xff]  ;;  %v2138_v22 = vld [vmem:[#allocation5 + $0x70] sm:$0xff]  ;;  %v2139_v42 = vld [vmem:[#allocation5 + $0x78] sm:$0xff] }
 0x467   :  { %2495 = vmatprep.subr.bf16.mxu1 %v2150_v1  ;;  %v2154_v49 = vld [vmem:[#allocation5 + $0xf0] sm:$0xff]  ;;  %v2155_v43 = vld [vmem:[#allocation5 + $0xf8] sm:$0xff] }
 0x468   :  { %v2130_v46 = vld [vmem:[#allocation5 + $0x30] sm:$0xff]  ;;  %v2131_v62 = vld [vmem:[#allocation5 + $0x38] sm:$0xff] }
 0x469   :  { %2432 = vmatpush3.bf16.msra.mxu0 %v2126_v3  ;;  %v2146_v47 = vld [vmem:[#allocation5 + $0xb0] sm:$0xff]  ;;  %v2147_v15 = vld [vmem:[#allocation5 + $0xb8] sm:$0xff] }
 0x46a   :  { %2496 = vmatpush3.bf16.msra.mxu1 %v2142_v41  ;;  %2433 = vmatprep.subr.bf16.mxu0 %v2135_v57 }
 0x46b   :  { %2497 = vmatprep.subr.bf16.mxu1 %v2151_v24 }
 0x46d   :  { %2434 = vmatpush3.bf16.msra.mxu0 %v2127_v4 }
 0x46e   :  { %2498 = vmatpush3.bf16.msra.mxu1 %v2143_v54  ;;  %2435 = vmatprep.subr.bf16.mxu0 %v2136_v35 }
 0x46f   :  { %2499 = vmatprep.subr.bf16.mxu1 %v2152_v55 }
 0x471   :  { %2436 = vmatpush3.bf16.msra.mxu0 %v2128_v39 }
 0x472   :  { %2500 = vmatpush3.bf16.msra.mxu1 %v2144_v59  ;;  %2437 = vmatprep.subr.bf16.mxu0 %v2137_v52 }
 0x473   :  { %2501 = vmatprep.subr.bf16.mxu1 %v2153_v33 }
 0x475   :  { %2438 = vmatpush3.bf16.msra.mxu0 %v2129_v56 }
 0x476   :  { %2502 = vmatpush3.bf16.msra.mxu1 %v2145_v11  ;;  %2439 = vmatprep.subr.bf16.mxu0 %v2138_v22 }
 0x477   :  { %2503 = vmatprep.subr.bf16.mxu1 %v2154_v49 }
 0x479   :  { %2440 = vmatpush3.bf16.msra.mxu0 %v2130_v46 }
 0x47a   :  { %2504 = vmatpush3.bf16.msra.mxu1 %v2146_v47  ;;  %2441 = vmatprep.subr.bf16.mxu0 %v2139_v42 }
 0x47b   :  { %2505 = vmatprep.subr.bf16.mxu1 %v2155_v43 }
 0x47d   :  { %2442 = vmatpush3.bf16.msra.mxu0 %v2131_v62 }
 0x47e   :  { %2506 = vmatpush3.bf16.msra.mxu1 %v2147_v15 }
 0x480   :  { %2196 = vmatmul.mubr.bf16.vlgmr.msra.gmra.mrb[96].mxu0 %v3470_v48 }
 0x481   :  { %2293 = vmatmul.mubr.bf16.vlgmr.msra.gmra.mrb[96].mxu1 %v3472_v53  ;;  %2203 = vmatprep.mubr.bf16.mxu0 %v3490_v28 }
 0x482   :  { %2300 = vmatprep.mubr.bf16.mxu1 %v3492_v29 }
 0x488   :  { %2204 = vmatmul.mubr.bf16.gmra.mrb[100].mxu0 %v3486_v34  ;;  %v3625_v34 = vld [vmem:[%s3696_s5] ss:$0 sm:$0xff] }
 0x489   :  { %2301 = vmatmul.mubr.bf16.gmra.mrb[100].mxu1 %v3488_v27  ;;  %2211 = vmatprep.mubr.bf16.mxu0 %v3506_v37 }
 0x48a   :  { %2308 = vmatprep.mubr.bf16.mxu1 %v3508_v9 }
 0x490   :  { %2212 = vmatmul.mubr.bf16.gmra.mrb[104].mxu0 %v3502_v51 }
 0x491   :  { %2309 = vmatmul.mubr.bf16.gmra.mrb[104].mxu1 %v3504_v21  ;;  %2219 = vmatprep.mubr.bf16.mxu0 %v3522_v7 }
 0x492   :  { %2316 = vmatprep.mubr.bf16.mxu1 %v3524_v61 }
 0x498   :  { %2220 = vmatmul.mubr.bf16.gmra.mrb[108].mxu0 %v3518_v32 }
 0x499   :  { %2317 = vmatmul.mubr.bf16.gmra.mrb[108].mxu1 %v3520_v30  ;;  %2227 = vmatprep.mubr.bf16.mxu0 %v3538_v25 }
 0x49a   :  { %2324 = vmatprep.mubr.bf16.mxu1 %v3540_v14 }
 0x4a0   :  { %2228 = vmatmul.mubr.bf16.gmra.mrb[112].mxu0 %v3534_v23 }
 0x4a1   :  { %2325 = vmatmul.mubr.bf16.gmra.mrb[112].mxu1 %v3536_v6  ;;  %2235 = vmatprep.mubr.bf16.mxu0 %v3554_v38 }
 0x4a2   :  { %2332 = vmatprep.mubr.bf16.mxu1 %v3556_v45 }
 0x4a8   :  { %2236 = vmatmul.mubr.bf16.gmra.mrb[116].mxu0 %v3550_v36 }
 0x4a9   :  { %2333 = vmatmul.mubr.bf16.gmra.mrb[116].mxu1 %v3552_v44  ;;  %2243 = vmatprep.mubr.bf16.mxu0 %v3570_v10 }
 0x4aa   :  { %2340 = vmatprep.mubr.bf16.mxu1 %v3572_v40 }
 0x4b0   :  { %2244 = vmatmul.mubr.bf16.gmra.mrb[120].mxu0 %v3566_v8 }
 0x4b1   :  { %2341 = vmatmul.mubr.bf16.gmra.mrb[120].mxu1 %v3568_v58  ;;  %2251 = vmatprep.mubr.bf16.mxu0 %v3586_v63 }
 0x4b2   :  { %2348 = vmatprep.mubr.bf16.mxu1 %v3588_v31 }
 0x4b8   :  { %2252 = vmatmul.mubr.bf16.gmra.mrb[124].mxu0 %v3582_v19 }
 0x4b9   :  { %2349 = vmatmul.mubr.bf16.gmra.mrb[124].mxu1 %v3584_v17 }
 0x553   :  { %v2443_v48 = vpop.f32.mrb[96].mxu0 }
 0x554   :  { %v2507_v53 = vpop.f32.mrb[96].mxu1  ;;  %v2444_v27 = vpop.f32.mrb[97].mxu0 }
 0x555   :  { %v2508_v28 = vpop.f32.mrb[97].mxu1  ;;  %v2445_v29 = vadd.f32 %v2444_v27, %v2443_v48  ;;  %v2446_v21 = vpop.f32.mrb[98].mxu0 }
 0x556   :  { %v2509_v51 = vadd.f32 %v2508_v28, %v2507_v53  ;;  %v2510_v37 = vpop.f32.mrb[98].mxu1  ;;  %v2447_v9 = vpop.f32.mrb[99].mxu0 }
 0x557   :  { %v2511_v32 = vpop.f32.mrb[99].mxu1  ;;  %v2198_v30 = vadd.f32 %v2445_v29, %v3625_v34  ;;  %v2448_v7 = vadd.f32 %v2447_v9, %v2446_v21 }
 0x558   :  { %v2512_v61 = vadd.f32 %v2511_v32, %v2510_v37 }
 0x559   :  { %v2295_v23 = vadd.f32 %v2509_v51, %v2198_v30  ;;  %v2201_v6 = vadd.f32 %v2448_v7, %v3625_v34 }
 0x55b   :  { %2357 = vst [vmem:[%s3700_s9] sm:$0xff] %v2295_v23  ;;  %v2298_v25 = vadd.f32 %v2512_v61, %v2201_v6  ;;  %v2449_v14 = vpop.f32.mrb[100].mxu0 }
 0x55c   :  { %v2513_v36 = vpop.f32.mrb[100].mxu1  ;;  %v2450_v44 = vpop.f32.mrb[101].mxu0 }
 0x55d   :  { %v2514_v38 = vpop.f32.mrb[101].mxu1  ;;  %2358 = vst [vmem:[%s3700_s9 + $0x8] sm:$0xff] %v2298_v25  ;;  %v2451_v45 = vadd.f32 %v2450_v44, %v2449_v14  ;;  %v2452_v58 = vpop.f32.mrb[102].mxu0 }
 0x55e   :  { %v2515_v8 = vadd.f32 %v2514_v38, %v2513_v36  ;;  %v2516_v10 = vpop.f32.mrb[102].mxu1  ;;  %v2453_v40 = vpop.f32.mrb[103].mxu0 }
 0x55f   :  { %v2517_v16 = vpop.f32.mrb[103].mxu1  ;;  %v2206_v20 = vadd.f32 %v2451_v45, %v3625_v34  ;;  %v2454_v19 = vadd.f32 %v2453_v40, %v2452_v58 }
 0x560   :  { %v2518_v17 = vadd.f32 %v2517_v16, %v2516_v10 }
 0x561   :  { %v2303_v63 = vadd.f32 %v2515_v8, %v2206_v20  ;;  %v2209_v31 = vadd.f32 %v2454_v19, %v3625_v34 }
 0x563   :  { %2359 = vst [vmem:[%s3700_s9 + $0x10] sm:$0xff] %v2303_v63  ;;  %v2306_v5 = vadd.f32 %v2518_v17, %v2209_v31  ;;  %v2455_v12 = vpop.f32.mrb[104].mxu0 }
 0x564   :  { %v2519_v50 = vpop.f32.mrb[104].mxu1  ;;  %v2456_v2 = vpop.f32.mrb[105].mxu0 }
 0x565   :  { %v2520_v18 = vpop.f32.mrb[105].mxu1  ;;  %2360 = vst [vmem:[%s3700_s9 + $0x18] sm:$0xff] %v2306_v5  ;;  %v2457_v0 = vadd.f32 %v2456_v2, %v2455_v12  ;;  %v2458_v60 = vpop.f32.mrb[106].mxu0 }
 0x566   :  { %v2521_v26 = vadd.f32 %v2520_v18, %v2519_v50  ;;  %v2522_v13 = vpop.f32.mrb[106].mxu1  ;;  %v2459_v1 = vpop.f32.mrb[107].mxu0 }
 0x567   :  { %v2523_v3 = vpop.f32.mrb[107].mxu1  ;;  %v2214_v41 = vadd.f32 %v2457_v0, %v3625_v34  ;;  %v2460_v57 = vadd.f32 %v2459_v1, %v2458_v60 }
 0x568   :  { %v2524_v24 = vadd.f32 %v2523_v3, %v2522_v13 }
 0x569   :  { %v2311_v4 = vadd.f32 %v2521_v26, %v2214_v41  ;;  %v2217_v54 = vadd.f32 %v2460_v57, %v3625_v34 }
 0x56b   :  { %2361 = vst [vmem:[%s3700_s9 + $0x20] sm:$0xff] %v2311_v4  ;;  %v2314_v35 = vadd.f32 %v2524_v24, %v2217_v54  ;;  %v2461_v55 = vpop.f32.mrb[108].mxu0 }
 0x56c   :  { %v2525_v39 = vpop.f32.mrb[108].mxu1  ;;  %v2462_v59 = vpop.f32.mrb[109].mxu0 }
 0x56d   :  { %v2526_v52 = vpop.f32.mrb[109].mxu1  ;;  %2362 = vst [vmem:[%s3700_s9 + $0x28] sm:$0xff] %v2314_v35  ;;  %v2463_v33 = vadd.f32 %v2462_v59, %v2461_v55  ;;  %v2464_v11 = vpop.f32.mrb[110].mxu0 }
 0x56e   :  { %v2527_v56 = vadd.f32 %v2526_v52, %v2525_v39  ;;  %v2528_v22 = vpop.f32.mrb[110].mxu1  ;;  %v2465_v49 = vpop.f32.mrb[111].mxu0 }
 0x56f   :  { %v2529_v46 = vpop.f32.mrb[111].mxu1  ;;  %v2222_v47 = vadd.f32 %v2463_v33, %v3625_v34  ;;  %v2466_v42 = vadd.f32 %v2465_v49, %v2464_v11 }
 0x570   :  { %v2530_v43 = vadd.f32 %v2529_v46, %v2528_v22 }
 0x571   :  { %v2319_v62 = vadd.f32 %v2527_v56, %v2222_v47  ;;  %v2225_v15 = vadd.f32 %v2466_v42, %v3625_v34 }
 0x573   :  { %2363 = vst [vmem:[%s3700_s9 + $0x30] sm:$0xff] %v2319_v62  ;;  %v2322_v48 = vadd.f32 %v2530_v43, %v2225_v15  ;;  %v2467_v53 = vpop.f32.mrb[112].mxu0 }
 0x574   :  { %v2531_v27 = vpop.f32.mrb[112].mxu1  ;;  %v2468_v28 = vpop.f32.mrb[113].mxu0 }
 0x575   :  { %v2532_v29 = vpop.f32.mrb[113].mxu1  ;;  %2364 = vst [vmem:[%s3700_s9 + $0x38] sm:$0xff] %v2322_v48  ;;  %v2469_v51 = vadd.f32 %v2468_v28, %v2467_v53  ;;  %v2470_v37 = vpop.f32.mrb[114].mxu0 }
 0x576   :  { %v2533_v21 = vadd.f32 %v2532_v29, %v2531_v27  ;;  %v2534_v9 = vpop.f32.mrb[114].mxu1  ;;  %v2471_v32 = vpop.f32.mrb[115].mxu0 }
 0x577   :  { %v2535_v30 = vpop.f32.mrb[115].mxu1  ;;  %v2230_v7 = vadd.f32 %v2469_v51, %v3625_v34  ;;  %v2472_v61 = vadd.f32 %v2471_v32, %v2470_v37 }
 0x578   :  { %v2536_v23 = vadd.f32 %v2535_v30, %v2534_v9 }
 0x579   :  { %v2327_v6 = vadd.f32 %v2533_v21, %v2230_v7  ;;  %v2233_v25 = vadd.f32 %v2472_v61, %v3625_v34 }
 0x57b   :  { %2365 = vst [vmem:[%s3700_s9 + $0x40] sm:$0xff] %v2327_v6  ;;  %v2330_v14 = vadd.f32 %v2536_v23, %v2233_v25  ;;  %v2473_v36 = vpop.f32.mrb[116].mxu0 }
 0x57c   :  { %v2537_v44 = vpop.f32.mrb[116].mxu1  ;;  %v2474_v38 = vpop.f32.mrb[117].mxu0 }
 0x57d   :  { %v2538_v45 = vpop.f32.mrb[117].mxu1  ;;  %2366 = vst [vmem:[%s3700_s9 + $0x48] sm:$0xff] %v2330_v14  ;;  %v2475_v8 = vadd.f32 %v2474_v38, %v2473_v36  ;;  %v2476_v10 = vpop.f32.mrb[118].mxu0 }
 0x57e   :  { %v2539_v58 = vadd.f32 %v2538_v45, %v2537_v44  ;;  %v2540_v40 = vpop.f32.mrb[118].mxu1  ;;  %v2477_v16 = vpop.f32.mrb[119].mxu0 }
 0x57f   :  { %v2541_v20 = vpop.f32.mrb[119].mxu1  ;;  %v2238_v19 = vadd.f32 %v2475_v8, %v3625_v34  ;;  %v2478_v17 = vadd.f32 %v2477_v16, %v2476_v10 }
 0x580   :  { %v2542_v63 = vadd.f32 %v2541_v20, %v2540_v40 }
 0x581   :  { %v2335_v31 = vadd.f32 %v2539_v58, %v2238_v19  ;;  %v2241_v5 = vadd.f32 %v2478_v17, %v3625_v34 }
 0x583   :  { %2367 = vst [vmem:[%s3700_s9 + $0x50] sm:$0xff] %v2335_v31  ;;  %v2338_v12 = vadd.f32 %v2542_v63, %v2241_v5  ;;  %v2479_v50 = vpop.f32.mrb[120].mxu0 }
 0x584   :  { %v2543_v2 = vpop.f32.mrb[120].mxu1  ;;  %v2480_v18 = vpop.f32.mrb[121].mxu0 }
 0x585   :  { %v2544_v0 = vpop.f32.mrb[121].mxu1  ;;  %2368 = vst [vmem:[%s3700_s9 + $0x58] sm:$0xff] %v2338_v12  ;;  %v2481_v26 = vadd.f32 %v2480_v18, %v2479_v50  ;;  %v2482_v13 = vpop.f32.mrb[122].mxu0 }
 0x586   :  { %v2545_v60 = vadd.f32 %v2544_v0, %v2543_v2  ;;  %v2546_v1 = vpop.f32.mrb[122].mxu1  ;;  %v2483_v3 = vpop.f32.mrb[123].mxu0 }
 0x587   :  { %v2547_v41 = vpop.f32.mrb[123].mxu1  ;;  %v2246_v57 = vadd.f32 %v2481_v26, %v3625_v34  ;;  %v2484_v24 = vadd.f32 %v2483_v3, %v2482_v13 }
 0x588   :  { %v2548_v4 = vadd.f32 %v2547_v41, %v2546_v1 }
 0x589   :  { %v2343_v54 = vadd.f32 %v2545_v60, %v2246_v57  ;;  %v2249_v35 = vadd.f32 %v2484_v24, %v3625_v34 }
 0x58b   :  { %2369 = vst [vmem:[%s3700_s9 + $0x60] sm:$0xff] %v2343_v54  ;;  %v2346_v55 = vadd.f32 %v2548_v4, %v2249_v35  ;;  %v2485_v39 = vpop.f32.mrb[124].mxu0 }
 0x58c   :  { %v2549_v59 = vpop.f32.mrb[124].mxu1  ;;  %v2486_v52 = vpop.f32.mrb[125].mxu0 }
 0x58d   :  { %v2550_v33 = vpop.f32.mrb[125].mxu1  ;;  %2370 = vst [vmem:[%s3700_s9 + $0x68] sm:$0xff] %v2346_v55  ;;  %v2487_v56 = vadd.f32 %v2486_v52, %v2485_v39  ;;  %v2488_v22 = vpop.f32.mrb[126].mxu0 }
 0x58e   :  { %v2551_v11 = vadd.f32 %v2550_v33, %v2549_v59  ;;  %v2552_v49 = vpop.f32.mrb[126].mxu1  ;;  %v2489_v46 = vpop.f32.mrb[127].mxu0 }
 0x58f   :  { %v2553_v47 = vpop.f32.mrb[127].mxu1  ;;  %v2254_v42 = vadd.f32 %v2487_v56, %v3625_v34  ;;  %v2490_v43 = vadd.f32 %v2489_v46, %v2488_v22 }
 0x590   :  { %v2554_v62 = vadd.f32 %v2553_v47, %v2552_v49 }
 0x591   :  { %v2351_v15 = vadd.f32 %v2551_v11, %v2254_v42  ;;  %v2257_v48 = vadd.f32 %v2490_v43, %v3625_v34 }
 0x593   :  { %2371 = vst [vmem:[%s3700_s9 + $0x70] sm:$0xff] %v2351_v15  ;;  %v2354_v53 = vadd.f32 %v2554_v62, %v2257_v48 }
 0x595   :  { %2372 = vst [vmem:[%s3700_s9 + $0x78] sm:$0xff] %v2354_v53 }
 0x596   :  { %2377 = vsyncmov [#allocation6] }
 0x599   :  { %s2378_s5 = vpop.sfrf %2377 }
 0x59a   :  { %p2424_p8 = scmp.ne.s32.totalorder %s2378_s5, 0 }
 0x59c   :  { %2382 = shalt.err (%p2424_p8)  }
 0x59d   :  { %2384 = vsyncmov [#allocation6 + $0x1] }
 0x5a0   :  { %s2385_s15 = vpop.sfrf %2384 }
 0x5a1   :  { %p2425_p9 = scmp.ne.s32.totalorder %s2385_s15, 0 }
 0x5a3   :  { %2389 = shalt.err (%p2425_p9)  }
 0x5a4   :  { %2391 = vsyncmov [#allocation6 + $0x2] }
 0x5a7   :  { %s2392_s13 = vpop.sfrf %2391 }
 0x5a8   :  { %p2426_p10 = scmp.ne.s32.totalorder %s2392_s13, 0 }
 0x5aa   :  { %2396 = shalt.err (%p2426_p10)  }

</bundles_post_ra>
